<compile_context>
chip_gen: v6e
topology: v6e:2x2x1
jax: 0.10.0
libtpu: 0.0.40
codegen_flags: <defaults>
</compile_context>

<pallas_src>
import functools
import math

import jax
import jax.numpy as jnp
from jax.experimental import pallas as pl
from jax.experimental.pallas import tpu as pltpu

_LANE = 128
_PACK_ROWS = 16                 # sublane-padded rows for the packed a / f scratch
_NEG_MASK = -9e15               # PyTorch's adjacency-mask constant
_NEG_PAD = -1e30                # padded (nonexistent) columns -> exp underflows to 0
_MATMUL_DTYPE = jnp.bfloat16    # feed the MXU natively; accumulate in f32
_SINGLE_BUFFER_WEIGHT_BYTES = 4 << 20   # single-buffer W/a only when they are big
_ROW_TILE_VMEM_BUDGET = 40 << 20        # sized against v7x's 64 MiB physical VMEM


def _round_up(v, m):
    return ((v + m - 1) // m) * m


def _estimate_vmem_bytes(np_, fip, fop, tq, single_buffer_weights):
    """Rough live-VMEM model for one grid step (double-buffered pipeline)."""
    mm = jnp.dtype(_MATMUL_DTYPE).itemsize
    f4 = 4
    w_bufs = 1 if single_buffer_weights else 2
    fixed = (2 * np_ * fip * mm                         # x block (per graph)
             + w_bufs * (fip * fop + _PACK_ROWS * fop) * mm   # W + packed a
             + np_ * fop * mm                           # h scratch
             + _PACK_ROWS * np_ * f4)                   # f_src/f_dst rows scratch
    per_tile = (2 * tq * np_ * mm                       # adj row tile
                + 2 * tq * fop * f4                     # output tile
                + 4 * tq * np_ * f4)                    # e / p / attn temporaries
    return fixed + per_tile


def _choose_row_tile(np_, fip, fop):
    cands = []
    for t in (np_, 512, 256, 128):
        if t <= np_ and np_ % t == 0 and t not in cands:
            cands.append(t)
    for tq in cands:
        if _estimate_vmem_bytes(np_, fip, fop, tq, True) <= _ROW_TILE_VMEM_BUDGET:
            return tq
    return cands[-1]


def _gat_kernel(x_ref, adj_ref, w_ref, a_ref, o_ref, h_ref, f_ref, *,
                alpha, concat, n_nodes, row_tile):
    r = pl.program_id(1)

    # ---- per-graph prologue (row tile 0): h = x @ W and both logit rows ------
    @pl.when(r == 0)
    def _():
        h = jnp.dot(x_ref[0], w_ref[...], preferred_element_type=jnp.float32)
        h_ref[...] = h.astype(h_ref.dtype)                     # (NP, FOP) bf16
        # f_ref row 0 = a_src . h[j], row 1 = a_dst . h[j] for every node j,
        # produced directly as lane rows (a @ h^T) -> no per-tile XLU transpose.
        f_ref[...] = jnp.einsum("sf,nf->sn", a_ref[...], h_ref[...],
                                preferred_element_type=jnp.float32)

    # ---- per row tile ---------------------------------------------------------
    row0 = pl.multiple_of(r * row_tile, row_tile)
    h_tile = h_ref[pl.ds(row0, row_tile), :]                   # (TQ, FOP) bf16
    # f_src for this tile's rows: tiny (TQ, PACK_ROWS) MXU pass, take lane 0.
    f_src = jnp.einsum("qf,sf->qs", h_tile, a_ref[...],
                       preferred_element_type=jnp.float32)[:, 0:1]   # (TQ, 1)
    f_dst = f_ref[1:2, :]                                      # (1, NP)

    # e[i, j] = LeakyReLU(a_src . h[i] + a_dst . h[j])
    e = f_src + f_dst                                          # (TQ, NP) f32
    e = jnp.where(e > 0, e, alpha * e)

    adj = adj_ref[0]                                           # (TQ, NP) bf16, 0/1
    col = jax.lax.broadcasted_iota(jnp.int32, e.shape, 1)
    e = jnp.where(adj > 0, e, _NEG_MASK)                       # PyTorch -9e15 mask
    e = jnp.where(col < n_nodes, e, _NEG_PAD)                  # padded cols -> weight 0

    # Row softmax (numerically stable); reciprocal goes to the EUP slot.
    m = jnp.max(e, axis=1, keepdims=True)
    p = jnp.exp(e - m)
    s = jnp.sum(p, axis=1, keepdims=True)
    attn = p * pl.reciprocal(s, approx=True)
    # TODO(synk): training-mode F.dropout(attn) not implemented (inference forward).

    out = jnp.dot(attn.astype(h_ref.dtype), h_ref[...],
                  preferred_element_type=jnp.float32)          # (TQ, FOP)
    if concat:
        # ELU (F.elu, alpha=1); clamp the exp argument in the unused branch.
        out = jnp.where(out > 0, out, jnp.exp(jnp.minimum(out, 0.0)) - 1.0)
    o_ref[0] = out.astype(o_ref.dtype)


def _pad_cast(arr, shape, dtype):
    """Zero-pad + cast; skipped entirely when the input is already aligned."""
    if arr.shape == shape and arr.dtype == dtype:
        return arr
    out = jnp.zeros(shape, dtype)
    return out.at[tuple(slice(0, s) for s in arr.shape)].set(arr.astype(dtype))


def graph_attention_layer(x, adj, w, a, *, alpha, concat=True, row_tile=None):
    """Batched GAT forward.

    x: (B, N, F_in), adj: (B, N, N), w: (F_in, F_out), a: (2*F_out, 1).
    Returns (B, N, F_out) in float32.
    """
    B, N, f_in = x.shape
    f_out = w.shape[1]
    assert adj.shape == (B, N, N)
    assert w.shape == (f_in, f_out)
    assert a.shape == (2 * f_out, 1)

    np_ = _round_up(N, _LANE)
    fip = _round_up(f_in, _LANE)
    fop = _round_up(f_out, _LANE)

    if row_tile is None:
        row_tile = _choose_row_tile(np_, fip, fop)
    assert np_ % row_tile == 0
    n_row_tiles = np_ // row_tile

    mm = _MATMUL_DTYPE
    x_p = _pad_cast(x, (B, np_, fip), mm)
    adj_p = _pad_cast(adj, (B, np_, np_), mm)     # 0/1 exact in bf16; halves adj DMA
    w_p = _pad_cast(w, (fip, fop), mm)
    a_rows = (jnp.zeros((_PACK_ROWS, fop), jnp.float32)
              .at[0, :f_out].set(a[:f_out, 0])    # row 0: a_src
              .at[1, :f_out].set(a[f_out:, 0])    # row 1: a_dst
              ).astype(mm)

    # Single-buffer the grid-invariant W / packed-a only when they are large
    # enough for the second pipeline buffer to be real VMEM waste (review item).
    single_buffer_weights = (fip * fop * jnp.dtype(mm).itemsize
                             >= _SINGLE_BUFFER_WEIGHT_BYTES)

    def _invariant(shape):
        if single_buffer_weights:
            return pl.BlockSpec(shape, lambda b, r: (0,) * len(shape),
                                pipeline_mode=pl.Buffered(1))
        return pl.BlockSpec(shape, lambda b, r: (0,) * len(shape))

    kernel = functools.partial(_gat_kernel, alpha=float(alpha),
                               concat=bool(concat), n_nodes=N, row_tile=row_tile)

    vmem_need = _estimate_vmem_bytes(np_, fip, fop, row_tile, single_buffer_weights)
    vmem_limit = int(min(96 << 20, max(32 << 20, int(1.25 * vmem_need))))

    out = pl.pallas_call(
        kernel,
        out_shape=jax.ShapeDtypeStruct((B, np_, fop), jnp.float32),
        grid_spec=pltpu.PrefetchScalarGridSpec(
            num_scalar_prefetch=0,
            grid=(B, n_row_tiles),
            in_specs=[
                pl.BlockSpec((1, np_, fip), lambda b, r: (b, 0, 0)),       # x (per graph)
                pl.BlockSpec((1, row_tile, np_), lambda b, r: (b, r, 0)),  # adj row tile
                _invariant((fip, fop)),                                    # W
                _invariant((_PACK_ROWS, fop)),                             # packed a rows
            ],
            out_specs=pl.BlockSpec((1, row_tile, fop), lambda b, r: (b, r, 0)),
            scratch_shapes=[
                pltpu.VMEM((np_, fop), mm),                  # per-graph h
                pltpu.VMEM((_PACK_ROWS, np_), jnp.float32),  # per-graph f_src/f_dst rows
            ],
        ),
        compiler_params=pltpu.CompilerParams(
            # batch axis parallel (megacore); row-tile axis arbitrary because the
            # per-graph h scratch is filled at tile 0.  If B < num_cores, hoist
            # h = x@W out of the kernel and mark both axes parallel instead.
            dimension_semantics=("parallel", "arbitrary"),
            vmem_limit_bytes=vmem_limit),
    )(x_p, adj_p, w_p, a_rows)
    return out[:, :N, :f_out]


def xavier_uniform(key, shape, gain):
    fan_in, fan_out = shape[0], shape[1]
    bound = gain * math.sqrt(6.0 / (fan_in + fan_out))
    return jax.random.uniform(key, shape, jnp.float32, -bound, bound)


def reference_gat(x, adj, w, a, alpha, concat=True, matmul_dtype=None):
    """Pure-JAX single-graph reference matching the PyTorch module.

    matmul_dtype=jnp.bfloat16 mirrors the kernel's MXU input precision (f32
    accumulation); None is the exact f32 module.
    """
    f_out = w.shape[1]
    if matmul_dtype is None:
        h = x @ w
        f_src = h @ a[:f_out]
        f_dst = h @ a[f_out:]
    else:
        md = matmul_dtype
        h = jnp.dot(x.astype(md), w.astype(md),
                    preferred_element_type=jnp.float32).astype(md)
        f_src = jnp.dot(h, a[:f_out].astype(md), preferred_element_type=jnp.float32)
        f_dst = jnp.dot(h, a[f_out:].astype(md), preferred_element_type=jnp.float32)
    e = jax.nn.leaky_relu(f_src + f_dst.T, negative_slope=alpha)
    e = jnp.where(adj > 0, e, _NEG_MASK)
    attn = jax.nn.softmax(e, axis=1)
    if matmul_dtype is None:
        h_prime = attn @ h
    else:
        h_prime = jnp.dot(attn.astype(matmul_dtype), h,
                          preferred_element_type=jnp.float32)
    return jax.nn.elu(h_prime) if concat else h_prime


def _run_case(key, B, N, F_IN, F_OUT, alpha, row_tile=None):
    kx, kadj, kw, ka = jax.random.split(key, 4)
    x = jax.random.normal(kx, (B, N, F_IN), jnp.float32)
    adj = (jax.random.uniform(kadj, (B, N, N)) > 0.5).astype(jnp.float32)
    adj = jnp.maximum(adj, jnp.eye(N, dtype=jnp.float32)[None])   # self-loops
    W = xavier_uniform(kw, (F_IN, F_OUT), gain=1.414)
    a = xavier_uniform(ka, (2 * F_OUT, 1), gain=1.414)

    out = graph_attention_layer(x, adj, W, a, alpha=alpha, concat=True,
                                row_tile=row_tile)
    out = jax.block_until_ready(out)
    assert out.shape == (B, N, F_OUT)

    # Tight check vs a bf16-MXU-matched reference, loose check vs the f32 module.
    ref_m = jax.vmap(lambda xb, ab: reference_gat(
        xb, ab, W, a, alpha, True, matmul_dtype=jnp.bfloat16))(x, adj)
    ref_f = jax.vmap(lambda xb, ab: reference_gat(
        xb, ab, W, a, alpha, True, matmul_dtype=None))(x, adj)
    err_m = float(jnp.max(jnp.abs(out - ref_m)))
    err_f = float(jnp.max(jnp.abs(out - ref_f)))
    assert jnp.allclose(out, ref_m, atol=1e-2, rtol=1e-2), \
        f"mismatch vs precision-matched reference, max abs err={err_m}"
    assert jnp.allclose(out, ref_f, atol=1e-1, rtol=1e-1), \
        f"mismatch vs f32 reference, max abs err={err_f}"


if __name__ == "__main__":
    ALPHA = 0.2
    root = jax.random.PRNGKey(0)

    # Small base case (single row tile per graph).
    _run_case(jax.random.fold_in(root, 0), B=4, N=8, F_IN=32, F_OUT=32, alpha=ALPHA)
    # Multi-row-tile path (NP=256 split into 2 tiles of 128) + unaligned feature dims.
    _run_case(jax.random.fold_in(root, 1), B=2, N=200, F_IN=48, F_OUT=40,
              alpha=ALPHA, row_tile=128)

    print("KERNEL_OK")
</pallas_src>

<mosaic_0001>
module attributes {stable_mosaic.version = 11 : i64} {
  func.func @_gat_kernel(%arg0: i32, %arg1: i32, %arg2: memref<1x128x128xbf16, #tpu.memory_space<vmem>>, %arg3: memref<1x128x128xbf16, #tpu.memory_space<vmem>>, %arg4: memref<128x128xbf16, #tpu.memory_space<vmem>>, %arg5: memref<16x128xbf16, #tpu.memory_space<vmem>>, %arg6: memref<1x128x128xf32, #tpu.memory_space<vmem>>, %arg7: memref<128x128xbf16, #tpu.memory_space<vmem>>, %arg8: memref<16x128xf32, #tpu.memory_space<vmem>>) attributes {dimension_semantics = [#tpu.dimension_semantics<parallel>, #tpu.dimension_semantics<arbitrary>], iteration_bounds = array<i64: 4, 1>, scalar_prefetch = 0 : i64, scratch_operands = 2 : i64, tpu.core_type = #tpu.core_type<tc>, window_params = [{transform_indices = @transform_0, window_bounds = array<i64: 1, 128, 128>}, {transform_indices = @transform_1, window_bounds = array<i64: 1, 128, 128>}, {pipeline_mode = #tpu.pipeline_mode<synchronous>, transform_indices = @transform_2, window_bounds = array<i64: 128, 128>}, {pipeline_mode = #tpu.pipeline_mode<synchronous>, transform_indices = @transform_3, window_bounds = array<i64: 16, 128>}, {transform_indices = @transform_4, window_bounds = array<i64: 1, 128, 128>}]} {
    %c0_i32 = arith.constant 0 : i32
    %0 = arith.cmpi eq, %arg1, %c0_i32 : i32
    %1 = arith.extui %0 : i1 to i32
    %c0_i32_0 = arith.constant 0 : i32
    %2 = arith.cmpi ne, %1, %c0_i32_0 : i32
    scf.if %2 {
      %c0_23 = arith.constant 0 : index
      %c0_24 = arith.constant 0 : index
      %c0_25 = arith.constant 0 : index
      %54 = vector.load %arg2[%c0_23, %c0_24, %c0_25] : memref<1x128x128xbf16, #tpu.memory_space<vmem>>, vector<1x128x128xbf16>
      %55 = vector.shape_cast %54 : vector<1x128x128xbf16> to vector<128x128xbf16>
      %c0_26 = arith.constant 0 : index
      %c0_27 = arith.constant 0 : index
      %56 = vector.load %arg4[%c0_26, %c0_27] : memref<128x128xbf16, #tpu.memory_space<vmem>>, vector<128x128xbf16>
      %cst_28 = arith.constant dense<0.000000e+00> : vector<128x128xf32>
      %57 = tpu.matmul %55, %56, %cst_28 {dimension_numbers = #tpu.dot_dimension_numbers<[1], [0], [0], [1], [0, 0, 1, 1], [], []>} : vector<128x128xbf16>, vector<128x128xbf16>, vector<128x128xf32> -> vector<128x128xf32>
      %58 = arith.truncf %57 : vector<128x128xf32> to vector<128x128xbf16>
      %c0_29 = arith.constant 0 : index
      %c0_30 = arith.constant 0 : index
      %59 = vector.load %arg7[%c0_29, %c0_30] : memref<128x128xbf16, #tpu.memory_space<vmem>>, vector<128x128xbf16>
      tpu.vector_store %arg7[%c0_29, %c0_30], %58 {strides = array<i32>} : memref<128x128xbf16, #tpu.memory_space<vmem>>, vector<128x128xbf16>,
      %c0_31 = arith.constant 0 : index
      %c0_32 = arith.constant 0 : index
      %60 = vector.load %arg5[%c0_31, %c0_32] : memref<16x128xbf16, #tpu.memory_space<vmem>>, vector<16x128xbf16>
      %c0_33 = arith.constant 0 : index
      %c0_34 = arith.constant 0 : index
      %61 = vector.load %arg7[%c0_33, %c0_34] : memref<128x128xbf16, #tpu.memory_space<vmem>>, vector<128x128xbf16>
      "tpu.trace_start"() <{level = 10 : i32, message = "sf,nf->sn"}> : () -> ()
      %cst_35 = arith.constant dense<0.000000e+00> : vector<16x128xf32>
      %62 = tpu.matmul %60, %61, %cst_35 {dimension_numbers = #tpu.dot_dimension_numbers<[1], [1], [0], [0], [0, 0, 1, 0], [], []>} : vector<16x128xbf16>, vector<128x128xbf16>, vector<16x128xf32> -> vector<16x128xf32>
      "tpu.trace_stop"() : () -> ()
      %c0_36 = arith.constant 0 : index
      %c0_37 = arith.constant 0 : index
      %63 = vector.load %arg8[%c0_36, %c0_37] : memref<16x128xf32, #tpu.memory_space<vmem>>, vector<16x128xf32>
      tpu.vector_store %arg8[%c0_36, %c0_37], %62 {strides = array<i32>} : memref<16x128xf32, #tpu.memory_space<vmem>>, vector<16x128xf32>,
    } else {
    }
    %c128_i32 = arith.constant 128 : i32
    %3 = arith.muli %arg1, %c128_i32 : i32
    %4 = tpu.assume_multiple %3, 128 : i32
    %5 = arith.index_cast %4 : i32 to index
    %c0 = arith.constant 0 : index
    %6 = vector.load %arg7[%5, %c0] : memref<128x128xbf16, #tpu.memory_space<vmem>>, vector<128x128xbf16>
    %c0_1 = arith.constant 0 : index
    %c0_2 = arith.constant 0 : index
    %7 = vector.load %arg5[%c0_1, %c0_2] : memref<16x128xbf16, #tpu.memory_space<vmem>>, vector<16x128xbf16>
    "tpu.trace_start"() <{level = 10 : i32, message = "qf,sf->qs"}> : () -> ()
    %cst = arith.constant dense<0.000000e+00> : vector<128x16xf32>
    %8 = tpu.matmul %6, %7, %cst {dimension_numbers = #tpu.dot_dimension_numbers<[1], [1], [0], [0], [0, 0, 1, 0], [], []>} : vector<128x128xbf16>, vector<16x128xbf16>, vector<128x16xf32> -> vector<128x16xf32>
    "tpu.trace_stop"() : () -> ()
    %9 = vector.extract_strided_slice %8 {offsets = [0, 0], sizes = [128, 1], strides = [1, 1]} : vector<128x16xf32> to vector<128x1xf32>
    %c1 = arith.constant 1 : index
    %c0_3 = arith.constant 0 : index
    %10 = vector.load %arg8[%c1, %c0_3] : memref<16x128xf32, #tpu.memory_space<vmem>>, vector<1x128xf32>
    %11 = vector.broadcast %9 : vector<128x1xf32> to vector<128x128xf32>
    %12 = vector.broadcast %10 : vector<1x128xf32> to vector<128x128xf32>
    %13 = arith.addf %11, %12 : vector<128x128xf32>
    %cst_4 = arith.constant 0.000000e+00 : f32
    %14 = vector.broadcast %cst_4 : f32 to vector<128x128xf32>
    %15 = arith.cmpf ogt, %13, %14 : vector<128x128xf32>
    %cst_5 = arith.constant 2.000000e-01 : f32
    %16 = vector.broadcast %cst_5 : f32 to vector<128x128xf32>
    %17 = arith.mulf %16, %13 : vector<128x128xf32>
    %18 = arith.select %15, %13, %17 : vector<128x128xi1>, vector<128x128xf32>
    %c0_6 = arith.constant 0 : index
    %c0_7 = arith.constant 0 : index
    %c0_8 = arith.constant 0 : index
    %19 = vector.load %arg3[%c0_6, %c0_7, %c0_8] : memref<1x128x128xbf16, #tpu.memory_space<vmem>>, vector<1x128x128xbf16>
    %20 = vector.shape_cast %19 : vector<1x128x128xbf16> to vector<128x128xbf16>
    %21 = tpu.iota {dimensions = array<i32: 1>} : vector<128x128xi32>
    %cst_9 = arith.constant 0.000000e+00 : bf16
    %22 = vector.broadcast %cst_9 : bf16 to vector<128x128xbf16>
    %23 = arith.cmpf ogt, %20, %22 : vector<128x128xbf16>
    %cst_10 = arith.constant -9.000000e+15 : f32
    %24 = vector.broadcast %cst_10 : f32 to vector<128x128xf32>
    %25 = arith.select %23, %18, %24 : vector<128x128xi1>, vector<128x128xf32>
    %c8_i32 = arith.constant 8 : i32
    %26 = vector.broadcast %c8_i32 : i32 to vector<128x128xi32>
    %27 = arith.cmpi slt, %21, %26 : vector<128x128xi32>
    %cst_11 = arith.constant -1.000000e+30 : f32
    %28 = vector.broadcast %cst_11 : f32 to vector<128x128xf32>
    %29 = arith.select %27, %25, %28 : vector<128x128xi1>, vector<128x128xf32>
    %cst_12 = arith.constant dense<0xFF800000> : vector<128xf32>
    %30 = vector.multi_reduction <maximumf>, %29, %cst_12 [1] : vector<128x128xf32> to vector<128xf32>
    %31 = vector.shape_cast %30 : vector<128xf32> to vector<128x1xf32>
    %32 = vector.broadcast %31 : vector<128x1xf32> to vector<128x128xf32>
    %33 = arith.subf %29, %32 : vector<128x128xf32>
    %34 = math.exp %33 : vector<128x128xf32>
    %cst_13 = arith.constant dense<0.000000e+00> : vector<128xf32>
    %35 = vector.multi_reduction <add>, %34, %cst_13 [1] : vector<128x128xf32> to vector<128xf32>
    %36 = vector.shape_cast %35 : vector<128xf32> to vector<128x1xf32>
    %37 = tpu.reciprocal %36 {approx = true} : vector<128x1xf32> -> vector<128x1xf32>
    %38 = vector.broadcast %37 : vector<128x1xf32> to vector<128x128xf32>
    %39 = arith.mulf %34, %38 : vector<128x128xf32>
    %40 = arith.truncf %39 : vector<128x128xf32> to vector<128x128xbf16>
    %c0_14 = arith.constant 0 : index
    %c0_15 = arith.constant 0 : index
    %41 = vector.load %arg7[%c0_14, %c0_15] : memref<128x128xbf16, #tpu.memory_space<vmem>>, vector<128x128xbf16>
    %cst_16 = arith.constant dense<0.000000e+00> : vector<128x128xf32>
    %42 = tpu.matmul %40, %41, %cst_16 {dimension_numbers = #tpu.dot_dimension_numbers<[1], [0], [0], [1], [0, 0, 1, 1], [], []>} : vector<128x128xbf16>, vector<128x128xbf16>, vector<128x128xf32> -> vector<128x128xf32>
    %cst_17 = arith.constant 0.000000e+00 : f32
    %43 = vector.broadcast %cst_17 : f32 to vector<128x128xf32>
    %44 = arith.cmpf ogt, %42, %43 : vector<128x128xf32>
    %cst_18 = arith.constant 0.000000e+00 : f32
    %45 = vector.broadcast %cst_18 : f32 to vector<128x128xf32>
    %46 = arith.minimumf %42, %45 : vector<128x128xf32>
    %47 = math.exp %46 : vector<128x128xf32>
    %cst_19 = arith.constant 1.000000e+00 : f32
    %48 = vector.broadcast %cst_19 : f32 to vector<128x128xf32>
    %49 = arith.subf %47, %48 : vector<128x128xf32>
    %50 = arith.select %44, %42, %49 : vector<128x128xi1>, vector<128x128xf32>
    %c0_20 = arith.constant 0 : index
    %c0_21 = arith.constant 0 : index
    %c0_22 = arith.constant 0 : index
    %51 = vector.load %arg6[%c0_20, %c0_21, %c0_22] : memref<1x128x128xf32, #tpu.memory_space<vmem>>, vector<1x128x128xf32>
    %52 = vector.shape_cast %51 : vector<1x128x128xf32> to vector<128x128xf32>
    %53 = vector.shape_cast %50 : vector<128x128xf32> to vector<1x128x128xf32>
    tpu.vector_store %arg6[%c0_20, %c0_21, %c0_22], %53 {strides = array<i32>} : memref<1x128x128xf32, #tpu.memory_space<vmem>>, vector<1x128x128xf32>,
    return
  }
  func.func @transform_0(%arg0: i32, %arg1: i32) -> (i32, i32, i32) {
    %c0_i32 = arith.constant 0 : i32
    %c0_i32_0 = arith.constant 0 : i32
    %c0_i32_1 = arith.constant 0 : i32
    return %arg0, %c0_i32, %c0_i32_0 : i32, i32, i32
  }
  func.func @transform_1(%arg0: i32, %arg1: i32) -> (i32, i32, i32) {
    %c0_i32 = arith.constant 0 : i32
    %c0_i32_0 = arith.constant 0 : i32
    return %arg0, %arg1, %c0_i32 : i32, i32, i32
  }
  func.func @transform_2(%arg0: i32, %arg1: i32) -> (i32, i32) {
    %c0_i32 = arith.constant 0 : i32
    %c0_i32_0 = arith.constant 0 : i32
    %c0_i32_1 = arith.constant 0 : i32
    return %c0_i32, %c0_i32_0 : i32, i32
  }
  func.func @transform_3(%arg0: i32, %arg1: i32) -> (i32, i32) {
    %c0_i32 = arith.constant 0 : i32
    %c0_i32_0 = arith.constant 0 : i32
    %c0_i32_1 = arith.constant 0 : i32
    return %c0_i32, %c0_i32_0 : i32, i32
  }
  func.func @transform_4(%arg0: i32, %arg1: i32) -> (i32, i32, i32) {
    %c0_i32 = arith.constant 0 : i32
    %c0_i32_0 = arith.constant 0 : i32
    return %arg0, %arg1, %c0_i32 : i32, i32, i32
  }
}

</mosaic_0001>

<bundles_post_ra>
// kernel: tpu_custom_call.1
= control target key start
LH: loop header
LB: loop body
LE: loop exit
PB: predicated region body
PF: predicated region fallthrough
CT: control target
= control target key end

     0   :  { %s3163_s0 = inlined_call_operand.hbm [shape: bf16[4,128,128], index: 0, kind: input, shape index: {}]   ;;  %s3164_s1 = inlined_call_operand.hbm [shape: bf16[4,128,128], index: 1, kind: input, shape index: {}]   ;;  %s3165_s2 = inlined_call_operand.hbm [shape: bf16[128,128], index: 2, kind: input, shape index: {}]   ;;  %s3166_s3 = inlined_call_operand.hbm [shape: bf16[16,128], index: 3, kind: input, shape index: {}]   ;;  %s3167_s4 = inlined_call_operand.hbm [shape: f32[4,128,128], index: 4, kind: output, shape index: {}]  }
   0x1   :  { %3172 = sst [smem:[#allocation18_spill]] %s3163_s0 }
   0x2   :  { %3173 = sst [smem:[#allocation19_spill]] %s3164_s1 }
   0x3   :  { %3174 = sst [smem:[#allocation20_spill]] %s3165_s2 }
   0x4   :  { %9 = vsyncpa [#allocation5], 0 }
   0x5   :  { %11 = vsyncpa [#allocation5 + $0x1], 0 }
   0x6   :  { %12 = vsyncpa [#allocation8], 0 }
   0x7   :  { %14 = vsyncpa [#allocation8 + $0x1], 0 }
   0x8   :  { %15 = vsyncpa [#allocation11], 0 }
   0x9   :  { %16 = vsyncpa [#allocation6], 0 }
   0xa   :  { %18 = vsyncpa [#allocation6 + $0x1], 0  ;;  %s2532_s15 = smov 0   ;;  %s2534_s16 = smov 0  }
   0xb   :  { %s2536_s17 = smov 0   ;;  %s2538_s18 = smov 0  }
   0xc   :  { %s2540_s19 = smov 0   ;;  %s2542_s20 = smov 0  }
   0xd LB: > { %s2563_s21 = sadd.s32 4294967295, %s2493_s20   ;;  %s1743_s22 = sadd.s32 4294967294, %s2493_s20   ;;  %s2493_s20 = sphi %s2542_s20, %s24_s20   ;;  %s2489_s19 = sphi %s2540_s19, %s3220_s19   ;;  %s2485_s18 = sphi %s2538_s18, %s3219_s18   ;;  %s2481_s17 = sphi %s2536_s17, %s3218_s17   ;;  %s2477_s16 = sphi %s2534_s16, %s3217_s16   ;;  %s2473_s15 = sphi %s2532_s15, %s3216_s15  }
   0xe   : > { %p56_p0 = scmp.ne.s32.totalorder %s2477_s16, %s2473_s15  ;;  %p57_p1 = scmp.eq.s32.totalorder %s2563_s21, 0 }
   0xf   : > { %p152_p2 = scmp.eq.s32.totalorder %s2563_s21, 3  ;;  %p158_p3 = scmp.eq.s32.totalorder %s1743_s22, 3 }
  0x10   : > { %p2572_p4 = por %p57_p1, %p56_p0  ;;  %p1744_p5 = scmp.ge.s32.totalorder %s2493_s20, 1 }
  0x11   : > { %p2577_p6 = por %p158_p3, %p56_p0  ;;  %p165_p7 = scmp.lt.s32.totalorder %s2493_s20, 5 }
  0x12   : > { %s2495_s26 = smov [#allocation9]   ;;  %s2496_s29 = smov [#allocation10]  }
  0x13   : > { %p2582_p8 = pnand %p1744_p5, %p165_p7  ;;  %s177_s27 = sshll.u32 %s2495_s26, 4  ;;  %s178_s27 = int_to_ptr.vmem [resolvable:$true] %s177_s27 }
  0x14   : > { %s190_s30 = sshll.u32 %s2496_s29, 4  ;;  %s2304_s5 = scalar_lea.vmem %s178_s27, 1024  ;;  %s191_s30 = int_to_ptr.vmem [resolvable:$true] %s190_s30 }
  0x15   : > { %p2072_p9 = pneg %p2582_p8  ;;  %p2305_p12 = scmp.ne.s32.totalorder %s178_s27, %s2304_s5 }
  0x16   : > { %p2312_p3 = scmp.lt.s32.totalorder %s178_s27, %s178_s27  ;;  %p2313_p5 = scmp.lt.s32.totalorder %s2304_s5, %s2304_s5 }
  0x17   : > { %p2590_p10 = pnand %p2072_p9, %p57_p1 }
  0x18   : > { %p2314_p7 = por %p2313_p5, %p2312_p3 }
  0x19   : > { %p2295_p11 = pneg %p2590_p10 }
  0x1b   : > { %p2307_p13 = pnand %p2305_p12, %p2295_p11 }
  0x1d   : > { %p2308_p0 = pneg %p2307_p13 }
  0x1f   : > { %p2315_p9 = pnand %p2314_p7, %p2308_p0 }
  0x21   : > { %2318 = shalt.err (!%p2315_p9)
}
  0x22   : > { %s3168_s6 = smov 64   ;;  %s3170_s7 = smov 4  }
  0x23   : > { %s3179_s2 = sld [smem:[#allocation20_spill]]  ;;  %s2330_s10 = scalar_lea.vmem %s191_s30, 128 }
  0x24   : > { %p2331_p12 = scmp.ne.s32.totalorder %s191_s30, %s2330_s10  ;;  %p2338_p0 = scmp.lt.s32.totalorder %s191_s30, %s191_s30 }
  0x25   : > { %p2339_p5 = scmp.lt.s32.totalorder %s2330_s10, %s2330_s10 }
  0x26   : > { %p2333_p13 = pnand %p2331_p12, %p2295_p11 }
  0x27   : > { %p2340_p7 = por %p2339_p5, %p2338_p0 }
  0x28   : > { %p2334_p3 = pneg %p2333_p13 }
  0x29   : > { %2075 = dma.hbm_to_vmem [thread:$0]  (!%p2590_p10), %s3179_s2, 1024, %s178_s27, [#allocation8], %s3168_s6, %s3168_s6, %s3170_s7  }
  0x2a   : > { %p2341_p9 = pnand %p2340_p7, %p2334_p3 }
  0x2c   : > { %2344 = shalt.err (!%p2341_p9)
}
  0x2d   : > { %2078 = dma.hbm_to_vmem [thread:$0]  (!%p2590_p10), %s3166_s3, 128, %s191_s30, [#allocation11], %s3168_s6, %s3168_s6, %s3170_s7  }
  0x2e   : > { %s36_s13 = sadd.s32 1, %s2489_s19  ;;  %s43_s14 = sadd.s32 1, %s2481_s17 }
  0x2f   : > { %p38_p11 = scmp.ge.s32.totalorder %s36_s13, 4  ;;  %p50_p12 = scmp.ne.s32.totalorder %s2481_s17, %s2477_s16 }
  0x30   : > { %p51_p13 = scmp.eq.s32.totalorder %s2493_s20, 0  ;;  %p2092_p3 = scmp.lt.s32.totalorder %s2493_s20, 4 }
  0x31   : > { %s3222_s13 = smov (%p38_p11, %s36_s13), 0  ;;  %p2628_p5 = por %p152_p2, %p50_p12 }
  0x32   : > { %p52_p0 = por %p51_p13, %p50_p12  ;;  %s40_s26 = ssub.s32 %s2489_s19, %s3222_s13 }
  0x33   : > { %s204_s27 = sand.u32 1, %s2481_s17   ;;  %p41_p7 = scmp.eq.s32.totalorder %s40_s26, 0 }
  0x34   : > { %s2635_s28 = sshll.u32 %s204_s27, 6  ;;  %s1840_s29 = sshll.u32 %s2489_s19, 10 }
  0x35   : > { %s2639_s30 = scalar_select %p41_p7, %s2481_s17, %s43_s14  }
  0x36   : > { %s3181_s0 = sld [smem:[#allocation18_spill]]  ;;  %s208_s10 = scalar_lea.vmem [#allocation4], %s2635_s28 }
  0x37   : > { %s215_s11 = sshll.u32 %s208_s10, 4  ;;  %p2647_p2 = pnand %p2092_p3, %p52_p0  ;;  %s216_s11 = int_to_ptr.vmem [resolvable:$true] %s215_s11 }
  0x38   : > { %s3183_s1 = sld [smem:[#allocation19_spill]]  ;;  %s205_s14 = scalar_lea.sflag [#allocation5], %s204_s27 }
  0x39   : > { %p2347_p10 = pneg %p2647_p2  ;;  %s2358_s5 = scalar_lea.vmem %s216_s11, 1024 }
  0x3a   : > { %p2359_p9 = scmp.ne.s32.totalorder %s216_s11, %s2358_s5  ;;  %s2499_s8 = smov [#allocation4]  }
  0x3b   : > { %s2363_s10 = sshll.u32 %s2499_s8, 4  ;;  %s2364_s10 = int_to_ptr.vmem [resolvable:$false] %s2363_s10 }
  0x3c   : > { %s214_s9 = scalar_lea.hbm %s3181_s0, %s1840_s29  ;;  %p2361_p11 = pnand %p2359_p9, %p2347_p10 }
  0x3d   : > { %s2365_s0 = scalar_lea.vmem %s2364_s10, 2048  ;;  %p2366_p13 = scmp.lt.s32.totalorder %s216_s11, %s2364_s10 }
  0x3e   : > { %s2654_s7 = scalar_lea.hbm %s3183_s1, %s1840_s29  ;;  %p2362_p12 = pneg %p2361_p11 }
  0x3f   : > { %p2367_p3 = scmp.lt.s32.totalorder %s2365_s0, %s2358_s5 }
  0x41   : > { %p2368_p0 = por %p2367_p3, %p2366_p13 }
  0x43   : > { %p2369_p7 = pnand %p2368_p0, %p2362_p12 }
  0x45   : > { %2372 = shalt.err (!%p2369_p7)
}
  0x46   : > { %s3184_s6 = smov 4   ;;  %s3185_s27 = smov 64  }
  0x47   : > { %2082 = dma.hbm_to_vmem [thread:$0]  (!%p2647_p2), %s214_s9, 1024, %s216_s11, %s205_s14, %s3185_s27, %s3185_s27, %s3184_s6  }
  0x48   : > { %s229_s29 = scalar_lea.vmem [#allocation7], %s2635_s28  ;;  %s225_s1 = sand.u32 1, %s2493_s20  }
  0x49   : > { %s238_s26 = sshll.u32 %s229_s29, 4  ;;  %s226_s8 = scalar_lea.sflag [#allocation8], %s225_s1  ;;  %s239_s26 = int_to_ptr.vmem [resolvable:$true] %s238_s26 }
  0x4a   : > { %s2386_s2 = scalar_lea.vmem %s239_s26, 1024  ;;  %s2500_s0 = smov [#allocation7]  }
  0x4b   : > { %p2387_p9 = scmp.ne.s32.totalorder %s239_s26, %s2386_s2  ;;  %s2391_s5 = sshll.u32 %s2500_s0, 4  ;;  %s2392_s5 = int_to_ptr.vmem [resolvable:$false] %s2391_s5 }
  0x4c   : > { %s2393_s10 = scalar_lea.vmem %s2392_s5, 2048  ;;  %p2394_p13 = scmp.lt.s32.totalorder %s239_s26, %s2392_s5 }
  0x4d   : > { %p2389_p11 = pnand %p2387_p9, %p2347_p10  ;;  %p2395_p3 = scmp.lt.s32.totalorder %s2393_s10, %s2386_s2 }
  0x4f   : > { %p2390_p12 = pneg %p2389_p11  ;;  %p2396_p0 = por %p2395_p3, %p2394_p13 }
  0x51   : > { %p2397_p7 = pnand %p2396_p0, %p2390_p12 }
  0x53   : > { %2400 = shalt.err (!%p2397_p7)
}
  0x54   : > { %2085 = dma.hbm_to_vmem [thread:$0]  (!%p2647_p2), %s2654_s7, 1024, %s239_s26, %s226_s8, %s3185_s27, %s3185_s27, %s3184_s6  }
  0x55   : > { %250 = sbr.rel (%p2582_p8) target bundleno = 1246 (0x4de), region = 36  ;;  %s2680_s1 = sand.u32 (!%p2582_p8), 1, %s2477_s16  }
  0x56   : > { %s1755_s2 = sshll.u32 (!%p2582_p8), %s2680_s1, 6  ;;  %s253_s28 = scalar_lea.sflag (!%p2582_p8), [#allocation5], %s2680_s1 }
  0x57   : > { %s2684_s9 = scalar_lea.vmem (!%p2582_p8), [#allocation4], %s1755_s2 }
  0x5a   : > { %2452 = dma.done.wait (%p2572_p4), %s253_s28, 1024  }
  0x5b   : > { %2454 = vsyncadd (%p2572_p4), %s253_s28, 4294966272  ;;  %s261_s7 = sand.u32 1, %s2563_s21   ;;  %s2691_s11 = scalar_lea.vmem [#allocation7], %s1755_s2 }
  0x5c   : > { %s262_s25 = scalar_lea.sflag [#allocation8], %s261_s7 }
  0x5d   : > { %2456 = dma.done.wait (%p2572_p4), %s262_s25, 1024  }
  0x5e   : > { %2458 = vsyncadd (%p2572_p4), %s262_s25, 4294966272 }
  0x5f   : > { %2460 = dma.done.wait (%p57_p1), [#allocation8], 1024  }
  0x60   : > { %2462 = vsyncadd (%p57_p1), [#allocation8], 4294966272 }
  0x61   : > { %2464 = dma.done.wait (%p57_p1), [#allocation11], 128  }
  0x62   : > { %2466 = vsyncadd (%p57_p1), [#allocation11], 4294967168  ;;  %v2155_v0 = vld [vmem:[#allocation9 + $0x38] sm:$0xff]   ;;  %v2156_v1 = vld [vmem:[#allocation9 + $0x30] sm:$0xff]   ;;  %v2501_v17 = vmov 0.0   ;;  %vm2502_vm0 = vmmov 0  }
  0x63   : > { %1956 = vmatprep.subr.bf16.mxu1 %v2155_v0  ;;  %v2157_v2 = vld [vmem:[#allocation9 + $0x28] sm:$0xff]   ;;  %v2158_v3 = vld [vmem:[#allocation9 + $0x20] sm:$0xff]   ;;  %v2159_v5 = vld [vmem:[#allocation9 + $0x18] sm:$0xff]   ;;  %v2503_v18 = vmov 0   ;;  %s1759_s21 = sshll.u32 %s2680_s1, 7  ;;  %s1858_s12 = sshll.u32 %s2485_s18, 11 }
  0x64   : > { %1957 = vmatpush3.bf16.msra.mxu1 %v2155_v0  ;;  %v2163_v4 = vld [vmem:[%s2684_s9] sm:$0xff]   ;;  %v2160_v6 = vld [vmem:[#allocation9 + $0x10] sm:$0xff]   ;;  %v2161_v7 = vld [vmem:[#allocation9 + $0x8] sm:$0xff]   ;;  %2153 = vset.pattern.permute.xlu1 %v2503_v18  ;;  %s3056_s23 = scalar_lea.vmem [#allocation12], %s1759_s21  ;;  %s3111_s29 = scalar_lea.hbm %s3167_s4, %s1858_s12 }
  0x65   : > { %1958 = vmatprep.subr.bf16.mxu1 %v2156_v1  ;;  %1972 = vmatprep.mubr.bf16.mxu1 %v2163_v4  ;;  %v2162_v8 = vld [vmem:[#allocation9] sm:$0xff]   ;;  %v2164_v9 = vld [vmem:[%s2684_s9 + $0x8] sm:$0xff]   ;;  %v2165_v10 = vld [vmem:[%s2684_s9 + $0x10] sm:$0xff]   ;;  %s1611_s14 = sshll.u32 %s3056_s23, 4  ;;  %s1596_s18 = scalar_lea.sflag [#allocation6], %s2680_s1  ;;  %s3113_s14 = int_to_ptr.vmem [resolvable:$true] %s1611_s14 }
  0x66   : > { %v2166_v11 = vld [vmem:[%s2684_s9 + $0x18] sm:$0xff]   ;;  %v2167_v12 = vld [vmem:[%s2684_s9 + $0x20] sm:$0xff]   ;;  %v2168_v13 = vld [vmem:[%s2684_s9 + $0x28] sm:$0xff]   ;;  %2154 = vset.pattern.permute.xlu0 %v2503_v18  ;;  %s2401_s26 = scalar_lea.vmem %s3113_s14, 2048  ;;  %s2504_s8 = smov [#allocation12]  }
  0x67   : > { %v2169_v14 = vld [vmem:[%s2684_s9 + $0x30] sm:$0xff]   ;;  %v2170_v15 = vld [vmem:[%s2684_s9 + $0x38] sm:$0xff]   ;;  %v2171_v16 = vld [vmem:[#allocation10] sm:$0xff]   ;;  %p2402_p1 = scmp.ne.s32.totalorder %s3113_s14, %s2401_s26  ;;  %s2405_s0 = sshll.u32 %s2504_s8, 4  ;;  %s2406_s0 = int_to_ptr.vmem [resolvable:$false] %s2405_s0 }
  0x68   : > { %1959 = vmatpush3.bf16.msra.mxu1 %v2156_v1  ;;  %2008 = vmatprep.subr.bf16.mxu0 %v2171_v16  ;;  %s2407_s5 = scalar_lea.vmem %s2406_s0, 4096  ;;  %p2408_p2 = scmp.lt.s32.totalorder %s3113_s14, %s2406_s0 }
  0x69   : > { %1960 = vmatprep.subr.bf16.mxu1 %v2157_v2  ;;  %2009 = vmatpush3.bf16.xpose.msra.mxu0 %v2171_v16  ;;  %p2403_p4 = pnand %p2402_p1, %p2628_p5  ;;  %p2409_p10 = scmp.lt.s32.totalorder %s2407_s5, %s2401_s26 }
  0x6b   : > { %p2404_p8 = pneg %p2403_p4  ;;  %p2410_p9 = por %p2409_p10, %p2408_p2 }
  0x6c   : > { %1961 = vmatpush3.bf16.msra.mxu1 %v2157_v2 }
  0x6d   : > { %1962 = vmatprep.subr.bf16.mxu1 %v2158_v3  ;;  %p2411_p11 = pnand %p2410_p9, %p2404_p8 }
  0x70   : > { %1963 = vmatpush3.bf16.msra.mxu1 %v2158_v3  ;;  %v2196_v3 = vld [vmem:[#allocation10] sm:$0xff]  }
  0x71   : > { %1964 = vmatprep.subr.bf16.mxu1 %v2159_v5 }
  0x74   : > { %1965 = vmatpush3.bf16.msra.mxu1 %v2159_v5 }
  0x75   : > { %1966 = vmatprep.subr.bf16.mxu1 %v2160_v6 }
  0x78   : > { %1967 = vmatpush3.bf16.msra.mxu1 %v2160_v6 }
  0x79   : > { %1968 = vmatprep.subr.bf16.mxu1 %v2161_v7 }
  0x7c   : > { %1969 = vmatpush3.bf16.msra.mxu1 %v2161_v7 }
  0x7d   : > { %1970 = vmatprep.subr.bf16.mxu1 %v2162_v8 }
  0x80   : > { %1971 = vmatpush3.bf16.msra.mxu1 %v2162_v8 }
  0x81   : > { %1988 = vmatprep.subr.bf16.mxu1 %v2501_v17 }
  0x83   : > { %1973 = vmatmul.mubr.bf16.vlgmr.msra.gmra.mxu1 %v2164_v9 }
  0x84   : > { %1976 = vmatprep.mubr.bf16.mxu1 %v2165_v10 }
  0x8b   : > { %1977 = vmatmul.mubr.bf16.gmra.mxu1 %v2166_v11 }
  0x8c   : > { %1980 = vmatprep.mubr.bf16.mxu1 %v2167_v12 }
  0x93   : > { %1981 = vmatmul.mubr.bf16.gmra.mxu1 %v2168_v13 }
  0x94   : > { %1984 = vmatprep.mubr.bf16.mxu1 %v2169_v14 }
  0x9b   : > { %1985 = vmatmul.mubr.bf16.gmra.mxu1 %v2170_v15 }
  0x9c   : > { %2004 = vmatprep.mubr.msk.bf16.mxu1 %vm2502_vm0, %v2501_v17 }
 0x143   : > { %v1974_v19 = vpop.f32.mrf.mxu1 }
 0x145   : > { %v474_v20 = vpop.f32.mrf.mxu1 }
 0x147   : > { %v1975_v21 = vpop.f32.mrf.mxu1 }
 0x148   : > { %v1867_v22 = vpack.c.bf16 %v1975_v21, %v1974_v19 }
 0x149   : > { %v477_v23 = vpop.f32.mrf.mxu1 }
 0x14a   : > { %1899 = vst [vmem:[#allocation2 + $0x8] sm:$0xff] %v1867_v22   ;;  %v1862_v24 = vpack.c.bf16 %v477_v23, %v474_v20 }
 0x14b   : > { %v1978_v25 = vpop.f32.mrf.mxu1 }
 0x14c   : > { %1863 = vst [vmem:[#allocation2] sm:$0xff] %v1862_v24  }
 0x14d   : > { %v490_v26 = vpop.f32.mrf.mxu1 }
 0x14f   : > { %v1979_v27 = vpop.f32.mrf.mxu1 }
 0x150   : > { %v1877_v28 = vpack.c.bf16 %v1979_v27, %v1978_v25  ;;  %v1057_v25 = vld [vmem:[%s2691_s11 + $0x8] sm:$0xf]  ;;  %v1056_v27 = vld [vmem:[%s2691_s11 + $0x4] sm:$0xf] }
 0x151   : > { %v493_v29 = vpop.f32.mrf.mxu1  ;;  %v2173_v33 = vld [vmem:[#allocation2 + $0x8] sm:$0xff]   ;;  %vm1075_vm1 = vcmp.gt.bf16.partialorder %v1057_v25, 0  ;;  %vm1074_vm3 = vcmp.gt.bf16.partialorder %v1056_v27, 0 }
 0x152   : > { %1901 = vst [vmem:[#allocation2 + $0x18] sm:$0xff] %v1877_v28   ;;  %v1872_v30 = vpack.c.bf16 %v493_v29, %v490_v26  ;;  %v2189_v60 = vld [vmem:[#allocation2 + $0x8] sm:$0xff]   ;;  %v1055_v26 = vld [vmem:[%s2691_s11] sm:$0xf]  ;;  %v1058_v28 = vld [vmem:[%s2691_s11 + $0xc] sm:$0xf]  ;;  %v1071_v29 = vlaneseq }
 0x153   : > { %v1982_v31 = vpop.f32.mrf.mxu1  ;;  %v2172_v32 = vld [vmem:[#allocation2] sm:$0xff]   ;;  %v2194_v1 = vld [vmem:[#allocation2 + $0x8] sm:$0xff]   ;;  %vm1073_vm2 = vcmp.gt.bf16.partialorder %v1055_v26, 0  ;;  %vm1076_vm4 = vcmp.gt.bf16.partialorder %v1058_v28, 0 }
 0x154   : > { %1900 = vst [vmem:[#allocation2 + $0x10] sm:$0xff] %v1872_v30   ;;  %2010 = vmatprep.mubr.bf16.mxu0 %v2172_v32  ;;  %v2191_v62 = vld [vmem:[#allocation2] sm:$0xff]   ;;  %v1091_v30 = vsel %vm1075_vm1, 65537, %v2503_v18  ;;  %v1089_v32 = vsel %vm1073_vm2, 65537, %v2503_v18  ;;  %v1069_v25 = vld [vmem:[%s2691_s11 + $0x38] sm:$0xf] }
 0x155   : > { %v506_v34 = vpop.f32.mrf.mxu1  ;;  %2011 = vmatmul.mubr.bf16.vlgmr.msra.gmra.mxu0 %v2173_v33  ;;  %v2195_v2 = vld [vmem:[#allocation2] sm:$0xff]   ;;  %v1090_v33 = vsel %vm1074_vm3, 65537, %v2503_v18 }
 0x157   : > { %v1983_v35 = vpop.f32.mrf.mxu1 }
 0x158   : > { %v1887_v36 = vpack.c.bf16 %v1983_v35, %v1982_v31  ;;  %v1061_v31 = vld [vmem:[%s2691_s11 + $0x18] sm:$0xf]  ;;  %v1059_v35 = vld [vmem:[%s2691_s11 + $0x10] sm:$0xf] }
 0x159   : > { %v509_v37 = vpop.f32.mrf.mxu1  ;;  %v2175_v41 = vld [vmem:[#allocation2 + $0x18] sm:$0xff]   ;;  %vm1079_vm5 = vcmp.gt.bf16.partialorder %v1061_v31, 0  ;;  %vm1077_vm6 = vcmp.gt.bf16.partialorder %v1059_v35, 0 }
 0x15a   : > { %1903 = vst [vmem:[#allocation2 + $0x28] sm:$0xff] %v1887_v36   ;;  %v1882_v38 = vpack.c.bf16 %v509_v37, %v506_v34  ;;  %v2186_v57 = vld [vmem:[#allocation2 + $0x18] sm:$0xff]   ;;  %v1092_v34 = vsel %vm1076_vm4, 65537, %v2503_v18  ;;  %v2736_v37 = vand.u32 127, %v1071_v29 }
 0x15b   : > { %v1986_v39 = vpop.f32.mrf.mxu1  ;;  %v2174_v40 = vld [vmem:[#allocation2 + $0x10] sm:$0xff]   ;;  %v2192_v63 = vld [vmem:[#allocation2 + $0x18] sm:$0xff]  }
 0x15c   : > { %1902 = vst [vmem:[#allocation2 + $0x20] sm:$0xff] %v1882_v38   ;;  %2014 = vmatprep.mubr.bf16.mxu0 %v2174_v40  ;;  %v2188_v59 = vld [vmem:[#allocation2 + $0x10] sm:$0xff]   ;;  %v1107_v38 = vunpack.c.l.b16 %v1091_v30  ;;  %vm1153_vm7 = vcmp.lt.s32.totalorder %v2736_v37, 8 }
 0x15d   : > { %v522_v42 = vpop.f32.mrf.mxu1  ;;  %2015 = vmatmul.mubr.bf16.gmra.mxu0 %v2175_v41  ;;  %v2193_v0 = vld [vmem:[#allocation2 + $0x10] sm:$0xff]   ;;  %v1105_v41 = vunpack.c.l.b16 %v1089_v32 }
 0x15e   : > { %vm2742_vm8 = vcmp.ne.s32.totalorder %v1107_v38, 0 }
 0x15f   : > { %v1987_v43 = vpop.f32.mrf.mxu1  ;;  %vm2750_vm11 = vcmp.ne.s32.totalorder %v1105_v41, 0 }
 0x160   : > { %v1897_v44 = vpack.c.bf16 %v1987_v43, %v1986_v39  ;;  %v1060_v39 = vld [vmem:[%s2691_s11 + $0x14] sm:$0xf]  ;;  %v1108_v43 = vunpack.c.l.b16 %v1092_v34 }
 0x161   : > { %v525_v45 = vpop.f32.mrf.mxu1  ;;  %v2177_v48 = vld [vmem:[#allocation2 + $0x28] sm:$0xff]   ;;  %vm1078_vm9 = vcmp.gt.bf16.partialorder %v1060_v39, 0 }
 0x162   : > { %1905 = vst [vmem:[#allocation2 + $0x38] sm:$0xff] %v1897_v44   ;;  %v1892_v46 = vpack.c.bf16 %v525_v45, %v522_v42  ;;  %v2183_v54 = vld [vmem:[#allocation2 + $0x28] sm:$0xff]   ;;  %v1106_v42 = vunpack.c.l.b16 %v1090_v33  ;;  %vm2758_vm14 = vcmp.ne.s32.totalorder %v1108_v43, 0 }
 0x163   : > { %v2176_v47 = vld [vmem:[#allocation2 + $0x20] sm:$0xff]   ;;  %v2187_v58 = vld [vmem:[#allocation2 + $0x28] sm:$0xff]  }
 0x164   : > { %1904 = vst [vmem:[#allocation2 + $0x30] sm:$0xff] %v1892_v46   ;;  %2018 = vmatprep.mubr.bf16.mxu0 %v2176_v47  ;;  %v2185_v56 = vld [vmem:[#allocation2 + $0x20] sm:$0xff]   ;;  %v1062_v44 = vld [vmem:[%s2691_s11 + $0x1c] sm:$0xf]  ;;  %vm2754_vm12 = vcmp.ne.s32.totalorder %v1106_v42, 0 }
 0x165   : > { %2019 = vmatmul.mubr.bf16.gmra.mxu0 %v2177_v48  ;;  %v2190_v61 = vld [vmem:[#allocation2 + $0x20] sm:$0xff]   ;;  %v1095_v48 = vsel %vm1079_vm5, 65537, %v2503_v18  ;;  %vm1080_vm10 = vcmp.gt.bf16.partialorder %v1062_v44, 0 }
 0x166   : > { %v1068_v44 = vld [vmem:[%s2691_s11 + $0x34] sm:$0xf] }
 0x169   : > { %v2178_v49 = vld [vmem:[#allocation2 + $0x38] sm:$0xff]  }
 0x16a   : > { %v2179_v50 = vld [vmem:[#allocation2 + $0x38] sm:$0xff]   ;;  %1989 = vmatpush3.bf16.xpose.msra.mxu1 %v2178_v49 }
 0x16b   : > { %v2180_v51 = vld [vmem:[#allocation2 + $0x30] sm:$0xff]   ;;  %2026 = vmatprep.subr.bf16.mxu0 %v2179_v50  ;;  %1990 = vmatprep.subr.bf16.mxu1 %v2501_v17  ;;  %v2182_v53 = vld [vmem:[#allocation2 + $0x38] sm:$0xff]  }
 0x16c   : > { %v2181_v52 = vld [vmem:[#allocation2 + $0x30] sm:$0xff]   ;;  %2027 = vmatpush3.bf16.msra.mxu0 %v2179_v50  ;;  %2022 = vmatprep.mubr.bf16.mxu0 %v2180_v51  ;;  %v1093_v51 = vsel %vm1077_vm6, 65537, %v2503_v18 }
 0x16d   : > { %2028 = vmatprep.subr.bf16.mxu0 %v2181_v52  ;;  %2023 = vmatmul.mubr.bf16.gmra.mxu0 %v2182_v53  ;;  %v2184_v55 = vld [vmem:[#allocation2 + $0x30] sm:$0xff]  }
 0x170   : > { %2029 = vmatpush3.bf16.msra.mxu0 %v2181_v52  ;;  %v1065_v52 = vld [vmem:[%s2691_s11 + $0x28] sm:$0xf] }
 0x171   : > { %2030 = vmatprep.subr.bf16.mxu0 %v2183_v54  ;;  %vm1083_vm0 = vcmp.gt.bf16.partialorder %v1065_v52, 0 }
 0x172   : > { %1991 = vmatpush3.bf16.xpose.msra.mxu1 %v2184_v55 }
 0x173   : > { %1992 = vmatprep.subr.bf16.mxu1 %v2501_v17 }
 0x174   : > { %2031 = vmatpush3.bf16.msra.mxu0 %v2183_v54 }
 0x175   : > { %2032 = vmatprep.subr.bf16.mxu0 %v2185_v56 }
 0x178   : > { %2033 = vmatpush3.bf16.msra.mxu0 %v2185_v56 }
 0x179   : > { %2034 = vmatprep.subr.bf16.mxu0 %v2186_v57 }
 0x17a   : > { %1993 = vmatpush3.bf16.xpose.msra.mxu1 %v2187_v58 }
 0x17b   : > { %1994 = vmatprep.subr.bf16.mxu1 %v2501_v17 }
 0x17c   : > { %2035 = vmatpush3.bf16.msra.mxu0 %v2186_v57  ;;  %v1063_v57 = vld [vmem:[%s2691_s11 + $0x20] sm:$0xf] }
 0x17d   : > { %2036 = vmatprep.subr.bf16.mxu0 %v2188_v59  ;;  %vm1081_vm2 = vcmp.gt.bf16.partialorder %v1063_v57, 0 }
 0x180   : > { %2037 = vmatpush3.bf16.msra.mxu0 %v2188_v59 }
 0x181   : > { %2038 = vmatprep.subr.bf16.mxu0 %v2189_v60 }
 0x182   : > { %1995 = vmatpush3.bf16.xpose.msra.mxu1 %v2190_v61  ;;  %v1064_v61 = vld [vmem:[%s2691_s11 + $0x24] sm:$0xf] }
 0x183   : > { %1996 = vmatprep.subr.bf16.mxu1 %v2501_v17  ;;  %vm1082_vm3 = vcmp.gt.bf16.partialorder %v1064_v61, 0 }
 0x184   : > { %2039 = vmatpush3.bf16.msra.mxu0 %v2189_v60  ;;  %v1111_v60 = vunpack.c.l.b16 %v1095_v48 }
 0x185   : > { %2040 = vmatprep.subr.bf16.mxu0 %v2191_v62 }
 0x186   : > { %vm2781_vm6 = vcmp.ne.s32.totalorder %v1111_v60, 0 }
 0x188   : > { %2041 = vmatpush3.bf16.msra.mxu0 %v2191_v62 }
 0x18a   : > { %1997 = vmatpush3.bf16.xpose.msra.mxu1 %v2192_v63  ;;  %v1109_v63 = vunpack.c.l.b16 %v1093_v51 }
 0x18b   : > { %1998 = vmatprep.subr.bf16.mxu1 %v2501_v17 }
 0x192   : > { %1999 = vmatpush3.bf16.xpose.msra.mxu1 %v2193_v0  ;;  %v1094_v0 = vsel %vm1078_vm9, 65537, %v2503_v18 }
 0x193   : > { %2000 = vmatprep.subr.bf16.mxu1 %v2501_v17 }
 0x19a   : > { %2001 = vmatpush3.bf16.xpose.msra.mxu1 %v2194_v1  ;;  %v1096_v1 = vsel %vm1080_vm10, 65537, %v2503_v18 }
 0x19b   : > { %2002 = vmatprep.subr.bf16.mxu1 %v2501_v17 }
 0x1a2   : > { %2003 = vmatpush3.bf16.xpose.msra.mxu1 %v2195_v2  ;;  %v1066_v2 = vld [vmem:[%s2691_s11 + $0x2c] sm:$0xf] }
 0x1a3   : > { %vm1084_vm5 = vcmp.gt.bf16.partialorder %v1066_v2, 0 }
 0x1a9   : > { %2005 = vmatmul.mubr.bf16.vlgmr.msra.gmra.mxu1 %v2196_v3 }
 0x215   : > { %v2012_v4 = vpop.f32.mrf.mxu0 }
 0x216   : > { %919 = vperm.xlu1 %2153, %v2012_v4  }
 0x217   : > { %v843_v5 = vpop.f32.mrf.mxu0 }
 0x218   : > { %909 = vperm.xlu0 %2154, %v843_v5  }
 0x219   : > { %v2013_v6 = vpop.f32.mrf.mxu0 }
 0x21a   : > { %924 = vperm.xlu1 %2153, %v2013_v6  }
 0x21b   : > { %v846_v7 = vpop.f32.mrf.mxu0 }
 0x21c   : > { %914 = vperm.xlu0 %2154, %v846_v7  }
 0x21d   : > { %v2016_v8 = vpop.f32.mrf.mxu0 }
 0x21f   : > { %v859_v9 = vpop.f32.mrf.mxu0 }
 0x220   : > { %939 = vperm.xlu0 %2154, %v2016_v8  }
 0x221   : > { %v2017_v10 = vpop.f32.mrf.mxu0 }
 0x223   : > { %v862_v11 = vpop.f32.mrf.mxu0 }
 0x224   : > { %929 = vperm.xlu0 %2154, %v859_v9   ;;  %934 = vperm.xlu1 %2153, %v862_v11  }
 0x225   : > { %v2020_v12 = vpop.f32.mrf.mxu0 }
 0x227   : > { %v875_v13 = vpop.f32.mrf.mxu0 }
 0x228   : > { %944 = vperm.xlu1 %2153, %v2017_v10   ;;  %959 = vperm.xlu0 %2154, %v2020_v12  }
 0x229   : > { %v2021_v14 = vpop.f32.mrf.mxu0 }
 0x22b   : > { %v878_v15 = vpop.f32.mrf.mxu0 }
 0x22c   : > { %949 = vperm.xlu0 %2154, %v875_v13   ;;  %954 = vperm.xlu1 %2153, %v878_v15   ;;  %v1110_v13 = vunpack.c.l.b16 %v1094_v0  ;;  %v1099_v15 = vsel %vm1083_vm0, 65537, %v2503_v18 }
 0x22d   : > { %v2024_v16 = vpop.f32.mrf.mxu0  ;;  %v1115_v34 = vunpack.c.l.b16 %v1099_v15 }
 0x22e   : > { %vm2812_vm9 = vcmp.ne.s32.totalorder %v1110_v13, 0 }
 0x22f   : > { %v891_v17 = vpop.f32.mrf.mxu0 }
 0x230   : > { %964 = vperm.xlu1 %2153, %v2021_v14   ;;  %979 = vperm.xlu0 %2154, %v2024_v16  }
 0x231   : > { %v2025_v19 = vpop.f32.mrf.mxu0 }
 0x233   : > { %v894_v20 = vpop.f32.mrf.mxu0 }
 0x234   : > { %969 = vperm.xlu0 %2154, %v891_v17   ;;  %974 = vperm.xlu1 %2153, %v894_v20   ;;  %v1098_v20 = vsel %vm1082_vm3, 65537, %v2503_v18  ;;  %vm1086_vm3 = vcmp.gt.bf16.partialorder %v1068_v44, 0 }
 0x235   : > { %v1114_v33 = vunpack.c.l.b16 %v1098_v20  ;;  %v1102_v20 = vsel %vm1086_vm3, 65537, %v2503_v18 }
 0x237   : > { %vm2831_vm0 = vcmp.ne.s32.totalorder %v1114_v33, 0  ;;  %v1118_v33 = vunpack.c.l.b16 %v1102_v20 }
 0x238   : > { %984 = vperm.xlu1 %2153, %v2025_v19   ;;  %v1097_v19 = vsel %vm1081_vm2, 65537, %v2503_v18 }
 0x239   : > { %v1113_v32 = vunpack.c.l.b16 %v1097_v19 }
 0x269   : > { %v723_v21 = vpop.f32.mrf.mxu1 }
 0x26a   : > { %730 = vst [vmem:[#allocation3] sm:$0xff] %v723_v21 }
 0x26b   : > { %v2006_v22 = vpop.f32.mrf.mxu1 }
 0x26d   : > { %v726_v23 = vpop.f32.mrf.mxu1 }
 0x26e   : > { %v1112_v23 = vunpack.c.l.b16 %v1096_v1 }
 0x26f   : > { %v2007_v24 = vpop.f32.mrf.mxu1 }
 0x270   : > { %v1100_v24 = vsel %vm1084_vm5, 65537, %v2503_v18 }
 0x271   : > { %v2734_v36 = vld [vmem:[#allocation3 + $0x1] ss:$0 sm:$0xff]  ;;  %v1116_v43 = vunpack.c.l.b16 %v1100_v24 }
 0x291   : > { %v920_v40 = vpop.permute.xlu1 %919 }
 0x292   : > { %v993_v45 = vadd.f32 %v2734_v36, %v920_v40  ;;  %v1067_v40 = vld [vmem:[%s2691_s11 + $0x30] sm:$0xf] }
 0x293   : > { %v910_v46 = vpop.permute.xlu0 %909  ;;  %vm1085_vm2 = vcmp.gt.bf16.partialorder %v1067_v40, 0 }
 0x294   : > { %v1025_v49 = vmul.f32 0.2, %v993_v45  ;;  %v991_v50 = vadd.f32 %v2734_v36, %v910_v46  ;;  %vm1009_vm13 = vcmp.gt.f32.partialorder %v993_v45, 0.0 }
 0x295   : > { %v925_v53 = vpop.permute.xlu1 %924 }
 0x296   : > { %v1023_v58 = vmul.f32 0.2, %v991_v50  ;;  %v994_v59 = vadd.f32 %v2734_v36, %v925_v53  ;;  %vm1007_vm15 = vcmp.gt.f32.partialorder %v991_v50, 0.0  ;;  %v1041_v6 = vsel %vm1009_vm13, %v993_v45, %v1025_v49 }
 0x297   : > { %v915_v62 = vpop.permute.xlu0 %914  ;;  %v1139_v11 = vsel %vm2742_vm8, %v1041_v6, -9e+15  ;;  %vm2792_vm8 = vcmp.ne.s32.totalorder %v1109_v63, 0 }
 0x298   : > { %v1026_v3 = vmul.f32 0.2, %v994_v59  ;;  %v992_v4 = vadd.f32 %v2734_v36, %v915_v62  ;;  %v1039_v5 = vsel %vm1007_vm15, %v991_v50, %v1023_v58  ;;  %vm1010_vm1 = vcmp.gt.f32.partialorder %v994_v59, 0.0 }
 0x299   : > { %v1137_v7 = vsel %vm2750_vm11, %v1039_v5, -9e+15  ;;  %v2804_v27 = vsel %vm1153_vm7, %v1139_v11, -1e+30  ;;  %vm2821_vm11 = vcmp.ne.s32.totalorder %v1112_v23, 0  ;;  %vm2827_vm15 = vcmp.ne.s32.totalorder %v1113_v32, 0 }
 0x29a   : > { %v1024_v8 = vmul.f32 0.2, %v992_v4  ;;  %v2776_v9 = vsel %vm1153_vm7, %v1137_v7, -1e+30  ;;  %vm1008_vm4 = vcmp.gt.f32.partialorder %v992_v4, 0.0  ;;  %v1042_v12 = vsel %vm1010_vm1, %v994_v59, %v1026_v3 }
 0x29b   : > { %v940_v10 = vpop.permute.xlu0 %939  ;;  %1170 = vmax.xlane.f32.xlu0 %v2776_v9  ;;  %v1140_v28 = vsel %vm2758_vm14, %v1042_v12, -9e+15  ;;  %vm2835_vm1 = vcmp.ne.s32.totalorder %v1115_v34, 0  ;;  %v1070_v11 = vld [vmem:[%s2691_s11 + $0x3c] sm:$0xf] }
 0x29c   : > { %v997_v16 = vadd.f32 %v2734_v36, %v940_v10  ;;  %v1040_v17 = vsel %vm1008_vm4, %v992_v4, %v1024_v8  ;;  %v2819_v41 = vsel %vm1153_vm7, %v1140_v28, -1e+30  ;;  %vm2853_vm4 = vcmp.ne.s32.totalorder %v1116_v43, 0 }
 0x29d   : > { %v1138_v21 = vsel %vm2754_vm12, %v1040_v17, -9e+15  ;;  %vm1087_vm12 = vcmp.gt.bf16.partialorder %v1069_v25, 0  ;;  %v1101_v4 = vsel %vm1085_vm2, 65537, %v2503_v18 }
 0x29e   : > { %v2800_v26 = vsel %vm1153_vm7, %v1138_v21, -1e+30  ;;  %v1029_v29 = vmul.f32 0.2, %v997_v16  ;;  %vm1013_vm10 = vcmp.gt.f32.partialorder %v997_v16, 0.0  ;;  %v1103_v59 = vsel %vm1087_vm12, 65537, %v2503_v18 }
 0x29f   : > { %v930_v30 = vpop.permute.xlu0 %929  ;;  %v935_v31 = vpop.permute.xlu1 %934  ;;  %1172 = vmax.xlane.f32.xlu1 %v2800_v26  ;;  %1174 = vmax.xlane.f32.xlu0 %v2804_v27  ;;  %v1119_v15 = vunpack.c.l.b16 %v1103_v59 }
 0x2a0   : > { %v995_v35 = vadd.f32 %v2734_v36, %v930_v30  ;;  %v996_v38 = vadd.f32 %v2734_v36, %v935_v31  ;;  %v1045_v49 = vsel %vm1013_vm10, %v997_v16, %v1029_v29  ;;  %v1117_v29 = vunpack.c.l.b16 %v1101_v4 }
 0x2a1   : > { %v1143_v62 = vsel %vm2781_vm6, %v1045_v49, -9e+15  ;;  %vm1088_vm10 = vcmp.gt.bf16.partialorder %v1070_v11, 0  ;;  %vm2899_vm12 = vcmp.ne.s32.totalorder %v1119_v15, 0 }
 0x2a2   : > { %v1027_v45 = vmul.f32 0.2, %v995_v35  ;;  %v1028_v46 = vmul.f32 0.2, %v996_v38  ;;  %vm1011_vm13 = vcmp.gt.f32.partialorder %v995_v35, 0.0  ;;  %vm1012_vm14 = vcmp.gt.f32.partialorder %v996_v38, 0.0 }
 0x2a3   : > { %v945_v47 = vpop.permute.xlu1 %944  ;;  %v960_v48 = vpop.permute.xlu0 %959  ;;  %1176 = vmax.xlane.f32.xlu0 %v2819_v41  ;;  %v2869_v8 = vsel %vm1153_vm7, %v1143_v62, -1e+30  ;;  %v1104_v44 = vsel %vm1088_vm10, 65537, %v2503_v18 }
 0x2a4   : > { %v998_v53 = vadd.f32 %v2734_v36, %v945_v47  ;;  %v1001_v54 = vadd.f32 %v2734_v36, %v960_v48  ;;  %v1043_v55 = vsel %vm1011_vm13, %v995_v35, %v1027_v45  ;;  %v1044_v56 = vsel %vm1012_vm14, %v996_v38, %v1028_v46 }
 0x2a5   : > { %v1141_v57 = vsel %vm2792_vm8, %v1043_v55, -9e+15  ;;  %v1142_v58 = vsel %vm2812_vm9, %v1044_v56, -9e+15  ;;  %vm2914_vm14 = vcmp.ne.s32.totalorder %v1117_v29, 0 }
 0x2a6   : > { %v1030_v60 = vmul.f32 0.2, %v998_v53  ;;  %v2849_v61 = vsel %vm1153_vm7, %v1141_v57, -1e+30  ;;  %v1033_v0 = vmul.f32 0.2, %v1001_v54 }
 0x2a7   : > { %v950_v1 = vpop.permute.xlu0 %949  ;;  %v955_v2 = vpop.permute.xlu1 %954  ;;  %1178 = vmax.xlane.f32.xlu1 %v2849_v61  ;;  %v2860_v3 = vsel %vm1153_vm7, %v1142_v58, -1e+30  ;;  %vm1014_vm5 = vcmp.gt.f32.partialorder %v998_v53, 0.0  ;;  %vm1017_vm6 = vcmp.gt.f32.partialorder %v1001_v54, 0.0 }
 0x2a8   : > { %v999_v5 = vadd.f32 %v2734_v36, %v950_v1  ;;  %v1000_v6 = vadd.f32 %v2734_v36, %v955_v2  ;;  %1180 = vmax.xlane.f32.xlu0 %v2860_v3  ;;  %v1046_v7 = vsel %vm1014_vm5, %v998_v53, %v1030_v60  ;;  %v1049_v19 = vsel %vm1017_vm6, %v1001_v54, %v1033_v0 }
 0x2a9   : > { %v1144_v10 = vsel %vm2821_vm11, %v1046_v7, -9e+15  ;;  %v1147_v32 = vsel %vm2835_vm1, %v1049_v19, -9e+15  ;;  %v1120_v53 = vunpack.c.l.b16 %v1104_v44 }
 0x2aa   : > { %v1031_v12 = vmul.f32 0.2, %v999_v5  ;;  %v1032_v13 = vmul.f32 0.2, %v1000_v6  ;;  %v2876_v14 = vsel %vm1153_vm7, %v1144_v10, -1e+30 }
 0x2ab   : > { %v965_v16 = vpop.permute.xlu1 %964  ;;  %v980_v17 = vpop.permute.xlu0 %979  ;;  %1182 = vmax.xlane.f32.xlu1 %v2869_v8  ;;  %vm1015_vm8 = vcmp.gt.f32.partialorder %v999_v5, 0.0  ;;  %vm1016_vm9 = vcmp.gt.f32.partialorder %v1000_v6, 0.0  ;;  %v2910_v46 = vsel %vm1153_vm7, %v1147_v32, -1e+30  ;;  %vm1136_vm3 = vcmp.ne.s32.totalorder %v1120_v53, 0 }
 0x2ac   : > { %v1002_v21 = vadd.f32 %v2734_v36, %v965_v16  ;;  %v1005_v22 = vadd.f32 %v2734_v36, %v980_v17  ;;  %1184 = vmax.xlane.f32.xlu0 %v2876_v14  ;;  %v1047_v23 = vsel %vm1015_vm8, %v999_v5, %v1031_v12  ;;  %v1048_v24 = vsel %vm1016_vm9, %v1000_v6, %v1032_v13 }
 0x2ad   : > { %v1145_v25 = vsel %vm2827_vm15, %v1047_v23, -9e+15  ;;  %v1146_v28 = vsel %vm2831_vm0, %v1048_v24, -9e+15  ;;  %vm2922_vm0 = vcmp.ne.s32.totalorder %v1118_v33, 0 }
 0x2ae   : > { %v1034_v30 = vmul.f32 0.2, %v1002_v21  ;;  %v2890_v31 = vsel %vm1153_vm7, %v1145_v25, -1e+30  ;;  %v1037_v34 = vmul.f32 0.2, %v1005_v22 }
 0x2af   : > { %v970_v35 = vpop.permute.xlu0 %969  ;;  %1186 = vmax.xlane.f32.xlu1 %v2890_v31  ;;  %v2897_v38 = vsel %vm1153_vm7, %v1146_v28, -1e+30  ;;  %vm1018_vm11 = vcmp.gt.f32.partialorder %v1002_v21, 0.0  ;;  %v975_v42 = vpop.permute.xlu1 %974  ;;  %vm1021_vm13 = vcmp.gt.f32.partialorder %v1005_v22, 0.0 }
 0x2b0   : > { %v1003_v40 = vadd.f32 %v2734_v36, %v970_v35  ;;  %1188 = vmax.xlane.f32.xlu0 %v2897_v38  ;;  %v1050_v43 = vsel %vm1018_vm11, %v1002_v21, %v1034_v30  ;;  %v1004_v45 = vadd.f32 %v2734_v36, %v975_v42  ;;  %v1053_v52 = vsel %vm1021_vm13, %v1005_v22, %v1037_v34 }
 0x2b1   : > { %v1148_v47 = vsel %vm2853_vm4, %v1050_v43, -9e+15  ;;  %v1151_v62 = vsel %vm2899_vm12, %v1053_v52, -9e+15 }
 0x2b2   : > { %v1035_v49 = vmul.f32 0.2, %v1003_v40  ;;  %v2920_v50 = vsel %vm1153_vm7, %v1148_v47, -1e+30  ;;  %vm1019_vm15 = vcmp.gt.f32.partialorder %v1003_v40, 0.0  ;;  %vm1020_vm1 = vcmp.gt.f32.partialorder %v1004_v45, 0.0 }
 0x2b3   : > { %v1036_v51 = vmul.f32 0.2, %v1004_v45  ;;  %1190 = vmax.xlane.f32.xlu1 %v2910_v46  ;;  %v985_v54 = vpop.permute.xlu1 %984  ;;  %v2947_v1 = vsel %vm1153_vm7, %v1151_v62, -1e+30 }
 0x2b4   : > { %1192 = vmax.xlane.f32.xlu0 %v2920_v50  ;;  %v1051_v55 = vsel %vm1019_vm15, %v1003_v40, %v1035_v49  ;;  %v1006_v56 = vadd.f32 %v2734_v36, %v985_v54 }
 0x2b5   : > { %v1149_v57 = vsel %vm2914_vm14, %v1051_v55, -9e+15  ;;  %v1052_v58 = vsel %vm1020_vm1, %v1004_v45, %v1036_v51 }
 0x2b6   : > { %v2933_v59 = vsel %vm1153_vm7, %v1149_v57, -1e+30  ;;  %v1150_v60 = vsel %vm2922_vm0, %v1052_v58, -9e+15  ;;  %v1038_v63 = vmul.f32 0.2, %v1006_v56 }
 0x2b7   : > { %1194 = vmax.xlane.f32.xlu1 %v2933_v59  ;;  %v2942_v36 = vsel %vm1153_vm7, %v1150_v60, -1e+30  ;;  %vm1022_vm2 = vcmp.gt.f32.partialorder %v1006_v56, 0.0 }
 0x2b8   : > { %1196 = vmax.xlane.f32.xlu0 %v2942_v36  ;;  %v1054_v0 = vsel %vm1022_vm2, %v1006_v56, %v1038_v63 }
 0x2b9   : > { %v1152_v2 = vsel %vm1136_vm3, %v1054_v0, -9e+15 }
 0x2ba   : > { %v2952_v4 = vsel %vm1153_vm7, %v1152_v2, -1e+30 }
 0x2bb   : > { %1198 = vmax.xlane.f32.xlu1 %v2947_v1 }
 0x2bc   : > { %1200 = vmax.xlane.f32.xlu0 %v2952_v4 }
 0x324   : > { %v1171_v5 = vpop.xlane.xlu0 %1170 }
 0x325   : > { %v1202_v6 = vsub.f32 %v2776_v9, %v1171_v5 }
 0x327   : > { %v1218_v7 = vmul.f32 1.442695, %v1202_v6 }
 0x328   : > { %v1173_v10 = vpop.xlane.xlu1 %1172  ;;  %v1175_v11 = vpop.xlane.xlu0 %1174 }
 0x329   : > { %2197 = vpow2.f32 %v1218_v7  ;;  %v1203_v12 = vsub.f32 %v2800_v26, %v1173_v10  ;;  %v1204_v13 = vsub.f32 %v2804_v27, %v1175_v11 }
 0x32b   : > { %v1220_v15 = vmul.f32 1.442695, %v1203_v12  ;;  %v1222_v16 = vmul.f32 1.442695, %v1204_v13 }
 0x32c   : > { %v1177_v17 = vpop.xlane.xlu0 %1176 }
 0x32d   : > { %2199 = vpow2.f32 %v1220_v15  ;;  %v1205_v37 = vsub.f32 %v2819_v41, %v1177_v17 }
 0x32e   : > { %2201 = vpow2.f32 %v1222_v16 }
 0x32f   : > { %v1224_v19 = vmul.f32 1.442695, %v1205_v37 }
 0x330   : > { %v1179_v20 = vpop.xlane.xlu1 %1178 }
 0x331   : > { %2203 = vpow2.f32 %v1224_v19  ;;  %v1206_v9 = vsub.f32 %v2849_v61, %v1179_v20  ;;  %v1181_v21 = vpop.xlane.xlu0 %1180 }
 0x332   : > { %v1207_v22 = vsub.f32 %v2860_v3, %v1181_v21 }
 0x333   : > { %v1226_v23 = vmul.f32 1.442695, %v1206_v9 }
 0x334   : > { %v1228_v24 = vmul.f32 1.442695, %v1207_v22  ;;  %v1183_v26 = vpop.xlane.xlu1 %1182 }
 0x335   : > { %2205 = vpow2.f32 %v1226_v23  ;;  %v1208_v27 = vsub.f32 %v2869_v8, %v1183_v26  ;;  %v1185_v25 = vpop.xlane.xlu0 %1184 }
 0x336   : > { %v2962_v28 = vpop.eup %2197  ;;  %2207 = vpow2.f32 %v1228_v24  ;;  %v1209_v41 = vsub.f32 %v2876_v14, %v1185_v25 }
 0x337   : > { %v1230_v29 = vmul.f32 1.442695, %v1208_v27  ;;  %1250 = vadd.xlane.f32.xlu1 %v2962_v28 }
 0x338   : > { %v1232_v30 = vmul.f32 1.442695, %v1209_v41  ;;  %v1187_v61 = vpop.xlane.xlu1 %1186 }
 0x339   : > { %2209 = vpow2.f32 %v1230_v29  ;;  %v1210_v3 = vsub.f32 %v2890_v31, %v1187_v61  ;;  %v1189_v32 = vpop.xlane.xlu0 %1188 }
 0x33a   : > { %v2967_v33 = vpop.eup %2199  ;;  %2211 = vpow2.f32 %v1232_v30  ;;  %v1211_v8 = vsub.f32 %v2897_v38, %v1189_v32 }
 0x33b   : > { %v2970_v34 = vpop.eup %2201  ;;  %v1234_v35 = vmul.f32 1.442695, %v1210_v3  ;;  %1252 = vadd.xlane.f32.xlu0 %v2967_v33 }
 0x33c   : > { %v1236_v14 = vmul.f32 1.442695, %v1211_v8  ;;  %1254 = vadd.xlane.f32.xlu1 %v2970_v34  ;;  %v1191_v39 = vpop.xlane.xlu1 %1190 }
 0x33d   : > { %2213 = vpow2.f32 %v1234_v35  ;;  %v1212_v40 = vsub.f32 %v2910_v46, %v1191_v39  ;;  %v1193_v42 = vpop.xlane.xlu0 %1192 }
 0x33e   : > { %v2975_v31 = vpop.eup %2203  ;;  %2215 = vpow2.f32 %v1236_v14  ;;  %v1213_v43 = vsub.f32 %v2920_v50, %v1193_v42 }
 0x33f   : > { %v1238_v44 = vmul.f32 1.442695, %v1212_v40  ;;  %1256 = vadd.xlane.f32.xlu0 %v2975_v31 }
 0x340   : > { %v1240_v38 = vmul.f32 1.442695, %v1213_v43  ;;  %v1195_v45 = vpop.xlane.xlu1 %1194 }
 0x341   : > { %2217 = vpow2.f32 %v1238_v44  ;;  %v1214_v47 = vsub.f32 %v2933_v59, %v1195_v45  ;;  %v1197_v48 = vpop.xlane.xlu0 %1196 }
 0x342   : > { %v2980_v49 = vpop.eup %2205  ;;  %2219 = vpow2.f32 %v1240_v38  ;;  %v1215_v46 = vsub.f32 %v2942_v36, %v1197_v48 }
 0x343   : > { %v2983_v18 = vpop.eup %2207  ;;  %v1242_v51 = vmul.f32 1.442695, %v1214_v47  ;;  %1258 = vadd.xlane.f32.xlu1 %v2980_v49 }
 0x344   : > { %v1244_v50 = vmul.f32 1.442695, %v1215_v46  ;;  %1260 = vadd.xlane.f32.xlu0 %v2983_v18  ;;  %v1199_v52 = vpop.xlane.xlu1 %1198 }
 0x345   : > { %2221 = vpow2.f32 %v1242_v51  ;;  %v1216_v53 = vsub.f32 %v2947_v1, %v1199_v52  ;;  %v1201_v54 = vpop.xlane.xlu0 %1200 }
 0x346   : > { %v2988_v55 = vpop.eup %2209  ;;  %2223 = vpow2.f32 %v1244_v50  ;;  %v1217_v56 = vsub.f32 %v2952_v4, %v1201_v54 }
 0x347   : > { %v2991_v57 = vpop.eup %2211  ;;  %v1246_v58 = vmul.f32 1.442695, %v1216_v53  ;;  %1262 = vadd.xlane.f32.xlu1 %v2988_v55 }
 0x348   : > { %v1248_v59 = vmul.f32 1.442695, %v1217_v56  ;;  %1264 = vadd.xlane.f32.xlu0 %v2991_v57 }
 0x349   : > { %2225 = vpow2.f32 %v1246_v58 }
 0x34a   : > { %v2995_v60 = vpop.eup %2213  ;;  %2227 = vpow2.f32 %v1248_v59 }
 0x34b   : > { %v2997_v62 = vpop.eup %2215  ;;  %1266 = vadd.xlane.f32.xlu1 %v2995_v60 }
 0x34c   : > { %1268 = vadd.xlane.f32.xlu0 %v2997_v62 }
 0x34e   : > { %v3001_v63 = vpop.eup %2217 }
 0x34f   : > { %v3003_v36 = vpop.eup %2219  ;;  %1270 = vadd.xlane.f32.xlu1 %v3001_v63 }
 0x350   : > { %1272 = vadd.xlane.f32.xlu0 %v3003_v36 }
 0x352   : > { %v3007_v0 = vpop.eup %2221 }
 0x353   : > { %v3009_v1 = vpop.eup %2223  ;;  %1274 = vadd.xlane.f32.xlu1 %v3007_v0 }
 0x354   : > { %1276 = vadd.xlane.f32.xlu0 %v3009_v1 }
 0x356   : > { %v3013_v2 = vpop.eup %2225 }
 0x357   : > { %v3015_v4 = vpop.eup %2227  ;;  %1278 = vadd.xlane.f32.xlu1 %v3013_v2 }
 0x358   : > { %1280 = vadd.xlane.f32.xlu0 %v3015_v4 }
 0x3c0   : > { %v1251_v5 = vpop.xlane.xlu1 %1250 }
 0x3c1   : > { %2229 = vrcp.f32 %v1251_v5 }
 0x3c4   : > { %v1253_v6 = vpop.xlane.xlu0 %1252 }
 0x3c5   : > { %v1255_v7 = vpop.xlane.xlu1 %1254  ;;  %2231 = vrcp.f32 %v1253_v6 }
 0x3c6   : > { %2233 = vrcp.f32 %v1255_v7 }
 0x3c8   : > { %v1257_v10 = vpop.xlane.xlu0 %1256 }
 0x3c9   : > { %2235 = vrcp.f32 %v1257_v10 }
 0x3cc   : > { %v1259_v11 = vpop.xlane.xlu1 %1258 }
 0x3cd   : > { %2237 = vrcp.f32 %v1259_v11  ;;  %v1261_v12 = vpop.xlane.xlu0 %1260 }
 0x3ce   : > { %2239 = vrcp.f32 %v1261_v12  ;;  %v2230_v13 = vpop.eup %2229 }
 0x3cf   : > { %v1298_v37 = vmul.f32 %v2230_v13, %v2962_v28 }
 0x3d0   : > { %v1263_v15 = vpop.xlane.xlu1 %1262 }
 0x3d1   : > { %2241 = vrcp.f32 %v1263_v15  ;;  %v1265_v16 = vpop.xlane.xlu0 %1264 }
 0x3d2   : > { %v2232_v17 = vpop.eup %2231  ;;  %2243 = vrcp.f32 %v1265_v16 }
 0x3d3   : > { %v1299_v19 = vmul.f32 %v2232_v17, %v2967_v33  ;;  %v2234_v20 = vpop.eup %2233 }
 0x3d4   : > { %v1267_v9 = vpop.xlane.xlu1 %1266  ;;  %v1300_v24 = vmul.f32 %v2234_v20, %v2970_v34 }
 0x3d5   : > { %2245 = vrcp.f32 %v1267_v9  ;;  %v1269_v21 = vpop.xlane.xlu0 %1268  ;;  %v1314_v22 = vpack.c.bf16 %v1299_v19, %v1298_v37 }
 0x3d6   : > { %v2236_v23 = vpop.eup %2235  ;;  %2247 = vrcp.f32 %v1269_v21 }
 0x3d7   : > { %2042 = vmatprep.mubr.bf16.mxu0 %v1314_v22  ;;  %v1301_v26 = vmul.f32 %v2236_v23, %v2975_v31 }
 0x3d8   : > { %v1271_v27 = vpop.xlane.xlu1 %1270 }
 0x3d9   : > { %2249 = vrcp.f32 %v1271_v27  ;;  %v1273_v25 = vpop.xlane.xlu0 %1272  ;;  %v1315_v41 = vpack.c.bf16 %v1301_v26, %v1300_v24 }
 0x3da   : > { %v2238_v29 = vpop.eup %2237  ;;  %2251 = vrcp.f32 %v1273_v25 }
 0x3db   : > { %v2240_v28 = vpop.eup %2239  ;;  %2043 = vmatmul.mubr.bf16.vlgmr.msra.gmra.mxu0 %v1315_v41  ;;  %v1302_v30 = vmul.f32 %v2238_v29, %v2980_v49 }
 0x3dc   : > { %v1275_v61 = vpop.xlane.xlu1 %1274  ;;  %v1303_v3 = vmul.f32 %v2240_v28, %v2983_v18 }
 0x3dd   : > { %2253 = vrcp.f32 %v1275_v61  ;;  %v1277_v32 = vpop.xlane.xlu0 %1276 }
 0x3de   : > { %v2242_v33 = vpop.eup %2241  ;;  %2255 = vrcp.f32 %v1277_v32  ;;  %v1316_v8 = vpack.c.bf16 %v1303_v3, %v1302_v30 }
 0x3df   : > { %v2244_v34 = vpop.eup %2243  ;;  %v1304_v35 = vmul.f32 %v2242_v33, %v2988_v55 }
 0x3e0   : > { %2046 = vmatprep.mubr.bf16.mxu0 %v1316_v8  ;;  %v1279_v14 = vpop.xlane.xlu1 %1278  ;;  %v1305_v39 = vmul.f32 %v2244_v34, %v2991_v57 }
 0x3e1   : > { %2257 = vrcp.f32 %v1279_v14  ;;  %v1281_v40 = vpop.xlane.xlu0 %1280 }
 0x3e2   : > { %v2246_v42 = vpop.eup %2245  ;;  %2259 = vrcp.f32 %v1281_v40  ;;  %v1317_v31 = vpack.c.bf16 %v1305_v39, %v1304_v35 }
 0x3e3   : > { %v2248_v43 = vpop.eup %2247  ;;  %v1306_v44 = vmul.f32 %v2246_v42, %v2995_v60 }
 0x3e4   : > { %2047 = vmatmul.mubr.bf16.gmra.mxu0 %v1317_v31  ;;  %v1307_v38 = vmul.f32 %v2248_v43, %v2997_v62 }
 0x3e6   : > { %v2250_v45 = vpop.eup %2249  ;;  %v1318_v47 = vpack.c.bf16 %v1307_v38, %v1306_v44 }
 0x3e7   : > { %v2252_v48 = vpop.eup %2251  ;;  %v1308_v49 = vmul.f32 %v2250_v45, %v3001_v63 }
 0x3e8   : > { %2050 = vmatprep.mubr.bf16.mxu0 %v1318_v47  ;;  %v1309_v46 = vmul.f32 %v2252_v48, %v3003_v36 }
 0x3ea   : > { %v2254_v18 = vpop.eup %2253  ;;  %v1319_v51 = vpack.c.bf16 %v1309_v46, %v1308_v49 }
 0x3eb   : > { %v2256_v50 = vpop.eup %2255  ;;  %v1310_v52 = vmul.f32 %v2254_v18, %v3007_v0 }
 0x3ec   : > { %2051 = vmatmul.mubr.bf16.gmra.mxu0 %v1319_v51  ;;  %v1311_v53 = vmul.f32 %v2256_v50, %v3009_v1 }
 0x3ee   : > { %v2258_v54 = vpop.eup %2257  ;;  %v1320_v55 = vpack.c.bf16 %v1311_v53, %v1310_v52 }
 0x3ef   : > { %v2260_v56 = vpop.eup %2259  ;;  %v1312_v57 = vmul.f32 %v2258_v54, %v3013_v2 }
 0x3f0   : > { %2054 = vmatprep.mubr.bf16.mxu0 %v1320_v55  ;;  %v1313_v58 = vmul.f32 %v2260_v56, %v3015_v4 }
 0x3f2   : > { %v1321_v59 = vpack.c.bf16 %v1313_v58, %v1312_v57 }
 0x3f4   : > { %2055 = vmatmul.mubr.bf16.gmra.mxu0 %v1321_v59 }
 0x49b   : > { %v2044_v60 = vpop.f32.mrf.mxu0 }
 0x49c   : > { %v1501_v62 = vmin.f32 %v2044_v60, 0.0  ;;  %vm1485_vm7 = vcmp.gt.f32.partialorder %v2044_v60, 0.0 }
 0x49d   : > { %v1420_v63 = vpop.f32.mrf.mxu0 }
 0x49e   : > { %v1519_v36 = vmul.f32 1.442695, %v1501_v62  ;;  %v1499_v5 = vmin.f32 %v1420_v63, 0.0  ;;  %vm1483_vm4 = vcmp.gt.f32.partialorder %v1420_v63, 0.0 }
 0x49f   : > { %v2045_v6 = vpop.f32.mrf.mxu0 }
 0x4a0   : > { %2261 = vpow2.f32 %v1519_v36  ;;  %v1515_v0 = vmul.f32 1.442695, %v1499_v5  ;;  %v1502_v7 = vmin.f32 %v2045_v6, 0.0  ;;  %vm1486_vm5 = vcmp.gt.f32.partialorder %v2045_v6, 0.0 }
 0x4a1   : > { %v1423_v1 = vpop.f32.mrf.mxu0 }
 0x4a2   : > { %2263 = vpow2.f32 %v1515_v0  ;;  %v1521_v10 = vmul.f32 1.442695, %v1502_v7  ;;  %v1500_v11 = vmin.f32 %v1423_v1, 0.0  ;;  %vm1484_vm6 = vcmp.gt.f32.partialorder %v1423_v1, 0.0 }
 0x4a4   : > { %2265 = vpow2.f32 %v1521_v10  ;;  %v1517_v2 = vmul.f32 1.442695, %v1500_v11  ;;  %v3035_v12 = vpop.f32.mrf.mxu0 }
 0x4a5   : > { %v1505_v4 = vmin.f32 %v3035_v12, 0.0  ;;  %vm1489_vm8 = vcmp.gt.f32.partialorder %v3035_v12, 0.0 }
 0x4a6   : > { %2267 = vpow2.f32 %v1517_v2  ;;  %v3038_v13 = vpop.f32.mrf.mxu0 }
 0x4a7   : > { %v1527_v15 = vmul.f32 1.442695, %v1505_v4  ;;  %v1503_v16 = vmin.f32 %v3038_v13, 0.0  ;;  %vm1487_vm9 = vcmp.gt.f32.partialorder %v3038_v13, 0.0 }
 0x4a8   : > { %v3041_v17 = vpop.f32.mrf.mxu0 }
 0x4a9   : > { %2269 = vpow2.f32 %v1527_v15  ;;  %v1523_v37 = vmul.f32 1.442695, %v1503_v16  ;;  %v1506_v19 = vmin.f32 %v3041_v17, 0.0  ;;  %vm1490_vm10 = vcmp.gt.f32.partialorder %v3041_v17, 0.0 }
 0x4aa   : > { %v3044_v20 = vpop.f32.mrf.mxu0 }
 0x4ab   : > { %2271 = vpow2.f32 %v1523_v37  ;;  %v1529_v9 = vmul.f32 1.442695, %v1506_v19  ;;  %v1504_v21 = vmin.f32 %v3044_v20, 0.0  ;;  %vm1488_vm11 = vcmp.gt.f32.partialorder %v3044_v20, 0.0 }
 0x4ac   : > { %v3048_v22 = vpop.f32.mrf.mxu0 }
 0x4ad   : > { %v2262_v23 = vpop.eup %2261  ;;  %2273 = vpow2.f32 %v1529_v9  ;;  %v1525_v24 = vmul.f32 1.442695, %v1504_v21  ;;  %v1509_v26 = vmin.f32 %v3048_v22, 0.0  ;;  %vm1493_vm12 = vcmp.gt.f32.partialorder %v3048_v22, 0.0 }
 0x4ae   : > { %v1821_v27 = vadd.f32 -1.0, %v2262_v23  ;;  %v3051_v25 = vpop.f32.mrf.mxu0 }
 0x4af   : > { %v2264_v41 = vpop.eup %2263  ;;  %2275 = vpow2.f32 %v1525_v24  ;;  %v1535_v29 = vmul.f32 1.442695, %v1509_v26  ;;  %v1507_v28 = vmin.f32 %v3051_v25, 0.0  ;;  %vm1491_vm13 = vcmp.gt.f32.partialorder %v3051_v25, 0.0 }
 0x4b0   : > { %v1565_v30 = vsel %vm1485_vm7, %v2044_v60, %v1821_v27  ;;  %v1819_v61 = vadd.f32 -1.0, %v2264_v41  ;;  %v3054_v3 = vpop.f32.mrf.mxu0 }
 0x4b1   : > { %v2266_v32 = vpop.eup %2265  ;;  %1581 = vst [vmem:[%s3056_s23 + $0x10] sm:$0xff] %v1565_v30  ;;  %2277 = vpow2.f32 %v1535_v29  ;;  %v1531_v33 = vmul.f32 1.442695, %v1507_v28  ;;  %v1510_v8 = vmin.f32 %v3054_v3, 0.0  ;;  %vm1494_vm14 = vcmp.gt.f32.partialorder %v3054_v3, 0.0 }
 0x4b2   : > { %v1563_v34 = vsel %vm1483_vm4, %v1420_v63, %v1819_v61  ;;  %v1822_v35 = vadd.f32 -1.0, %v2266_v32  ;;  %v3060_v14 = vpop.f32.mrf.mxu0 }
 0x4b3   : > { %v2268_v39 = vpop.eup %2267  ;;  %1579 = vst [vmem:[%s3056_s23] sm:$0xff] %v1563_v34  ;;  %2279 = vpow2.f32 %v1531_v33  ;;  %v1537_v40 = vmul.f32 1.442695, %v1510_v8  ;;  %v1508_v42 = vmin.f32 %v3060_v14, 0.0  ;;  %vm1492_vm15 = vcmp.gt.f32.partialorder %v3060_v14, 0.0 }
 0x4b4   : > { %v1566_v31 = vsel %vm1486_vm5, %v2045_v6, %v1822_v35  ;;  %v1820_v43 = vadd.f32 -1.0, %v2268_v39  ;;  %v3064_v44 = vpop.f32.mrf.mxu0 }
 0x4b5   : > { %1582 = vst [vmem:[%s3056_s23 + $0x18] sm:$0xff] %v1566_v31  ;;  %2281 = vpow2.f32 %v1537_v40  ;;  %v1533_v38 = vmul.f32 1.442695, %v1508_v42  ;;  %v1513_v45 = vmin.f32 %v3064_v44, 0.0  ;;  %vm1497_vm0 = vcmp.gt.f32.partialorder %v3064_v44, 0.0 }
 0x4b6   : > { %v2270_v47 = vpop.eup %2269  ;;  %v1564_v48 = vsel %vm1484_vm6, %v1423_v1, %v1820_v43  ;;  %v3068_v49 = vpop.f32.mrf.mxu0 }
 0x4b7   : > { %1580 = vst [vmem:[%s3056_s23 + $0x8] sm:$0xff] %v1564_v48  ;;  %v1825_v46 = vadd.f32 -1.0, %v2270_v47  ;;  %2283 = vpow2.f32 %v1533_v38  ;;  %v1543_v18 = vmul.f32 1.442695, %v1513_v45  ;;  %v1511_v50 = vmin.f32 %v3068_v49, 0.0 }
 0x4b8   : > { %v2272_v51 = vpop.eup %2271  ;;  %v3073_v52 = vpop.f32.mrf.mxu0  ;;  %vm1495_vm1 = vcmp.gt.f32.partialorder %v3068_v49, 0.0 }
 0x4b9   : > { %v1569_v53 = vsel %vm1489_vm8, %v3035_v12, %v1825_v46  ;;  %v1823_v54 = vadd.f32 -1.0, %v2272_v51  ;;  %2285 = vpow2.f32 %v1543_v18  ;;  %v1539_v56 = vmul.f32 1.442695, %v1511_v50 }
 0x4ba   : > { %v2274_v55 = vpop.eup %2273  ;;  %1585 = vst [vmem:[%s3056_s23 + $0x30] sm:$0xff] %v1569_v53  ;;  %v1514_v57 = vmin.f32 %v3073_v52, 0.0  ;;  %v1471_v58 = vpop.f32.mrf.mxu0  ;;  %vm1498_vm2 = vcmp.gt.f32.partialorder %v3073_v52, 0.0 }
 0x4bb   : > { %v1567_v59 = vsel %vm1487_vm9, %v3038_v13, %v1823_v54  ;;  %v1826_v60 = vadd.f32 -1.0, %v2274_v55  ;;  %v1512_v62 = vmin.f32 %v1471_v58, 0.0  ;;  %2287 = vpow2.f32 %v1539_v56 }
 0x4bc   : > { %v2276_v63 = vpop.eup %2275  ;;  %1583 = vst [vmem:[%s3056_s23 + $0x20] sm:$0xff] %v1567_v59  ;;  %v1545_v36 = vmul.f32 1.442695, %v1514_v57  ;;  %vm1496_vm3 = vcmp.gt.f32.partialorder %v1471_v58, 0.0 }
 0x4bd   : > { %v1570_v5 = vsel %vm1490_vm10, %v3041_v17, %v1826_v60  ;;  %v1824_v6 = vadd.f32 -1.0, %v2276_v63  ;;  %v1541_v0 = vmul.f32 1.442695, %v1512_v62 }
 0x4be   : > { %v2278_v7 = vpop.eup %2277  ;;  %1586 = vst [vmem:[%s3056_s23 + $0x38] sm:$0xff] %v1570_v5  ;;  %2289 = vpow2.f32 %v1545_v36 }
 0x4bf   : > { %v1568_v1 = vsel %vm1488_vm11, %v3044_v20, %v1824_v6  ;;  %v1829_v10 = vadd.f32 -1.0, %v2278_v7  ;;  %2291 = vpow2.f32 %v1541_v0 }
 0x4c0   : > { %v2280_v11 = vpop.eup %2279  ;;  %1584 = vst [vmem:[%s3056_s23 + $0x28] sm:$0xff] %v1568_v1 }
 0x4c1   : > { %v1573_v2 = vsel %vm1493_vm12, %v3048_v22, %v1829_v10  ;;  %v1827_v12 = vadd.f32 -1.0, %v2280_v11 }
 0x4c2   : > { %v2282_v4 = vpop.eup %2281  ;;  %1589 = vst [vmem:[%s3056_s23 + $0x50] sm:$0xff] %v1573_v2 }
 0x4c3   : > { %v1571_v13 = vsel %vm1491_vm13, %v3051_v25, %v1827_v12  ;;  %v1830_v15 = vadd.f32 -1.0, %v2282_v4 }
 0x4c4   : > { %v2284_v16 = vpop.eup %2283  ;;  %1587 = vst [vmem:[%s3056_s23 + $0x40] sm:$0xff] %v1571_v13 }
 0x4c5   : > { %v1574_v17 = vsel %vm1494_vm14, %v3054_v3, %v1830_v15  ;;  %v1828_v37 = vadd.f32 -1.0, %v2284_v16 }
 0x4c6   : > { %v2286_v19 = vpop.eup %2285  ;;  %1590 = vst [vmem:[%s3056_s23 + $0x58] sm:$0xff] %v1574_v17 }
 0x4c7   : > { %v1572_v20 = vsel %vm1492_vm15, %v3060_v14, %v1828_v37  ;;  %v1833_v9 = vadd.f32 -1.0, %v2286_v19 }
 0x4c8   : > { %1588 = vst [vmem:[%s3056_s23 + $0x48] sm:$0xff] %v1572_v20  ;;  %v2288_v21 = vpop.eup %2287 }
 0x4c9   : > { %v1577_v22 = vsel %vm1497_vm0, %v3064_v44, %v1833_v9  ;;  %v1831_v23 = vadd.f32 -1.0, %v2288_v21 }
 0x4ca   : > { %1593 = vst [vmem:[%s3056_s23 + $0x70] sm:$0xff] %v1577_v22 }
 0x4cb   : > { %v2290_v24 = vpop.eup %2289  ;;  %v1575_v27 = vsel %vm1495_vm1, %v3068_v49, %v1831_v23 }
 0x4cc   : > { %v2292_v26 = vpop.eup %2291  ;;  %v1834_v25 = vadd.f32 -1.0, %v2290_v24  ;;  %1591 = vst [vmem:[%s3056_s23 + $0x60] sm:$0xff] %v1575_v27 }
 0x4cd   : > { %v1832_v41 = vadd.f32 -1.0, %v2292_v26 }
 0x4ce   : > { %v1578_v29 = vsel %vm1498_vm2, %v3073_v52, %v1834_v25 }
 0x4cf   : > { %1594 = vst [vmem:[%s3056_s23 + $0x78] sm:$0xff] %v1578_v29  ;;  %v1576_v28 = vsel %vm1496_vm3, %v1471_v58, %v1832_v41 }
 0x4d0   : > { %1592 = vst [vmem:[%s3056_s23 + $0x68] sm:$0xff] %v1576_v28 }
 0x4d1   : > { %2414 = shalt.err (!%p2411_p11)
}
 0x4d2   : > { %s2415_s10 = scalar_lea.hbm %s3111_s29, 2048  ;;  %s2419_s9 = scalar_lea.hbm %s3167_s4, 8192 }
 0x4d3   : > { %p2416_p12 = scmp.ne.s32.totalorder %s3111_s29, %s2415_s10  ;;  %p2420_p0 = scmp.lt.s32.totalorder %s3111_s29, %s3167_s4 }
 0x4d4   : > { %p2421_p7 = scmp.lt.s32.totalorder %s2419_s9, %s2415_s10 }
 0x4d5   : > { %p2417_p13 = pnand %p2416_p12, %p2628_p5 }
 0x4d6   : > { %p2422_p1 = por %p2421_p7, %p2420_p0 }
 0x4d7   : > { %p2418_p3 = pneg %p2417_p13 }
 0x4d9   : > { %p2423_p4 = pnand %p2422_p1, %p2418_p3 }
 0x4db   : > { %2426 = shalt.err (!%p2423_p4)
}
 0x4dc   : > { %s2505_s11 = smov 128   ;;  %s2506_s21 = smov 8  }
 0x4dd   : > { %2070 = dma.vmem_to_hbm [thread:$0]  (%p2628_p5), %s3113_s14, 2048, %s3111_s29, %s1596_s18, %s2505_s11, %s2505_s11, %s2506_s21  }
 0x4de PF: > { %p2095_p8 = scmp.ge.s32.totalorder %s2493_s20, 2  ;;  %s1626_s23 = sand.u32 1, %s2473_s15  }
 0x4df   : > { %s1627_s12 = scalar_lea.sflag [#allocation6], %s1626_s23 }
 0x4e0   : > { %p2087_p2 = pnand %p2095_p8, %p2577_p6 }
 0x4e2   : > { %p2088_p10 = pneg %p2087_p2 }
 0x4e4   : > { %2468 = dma.done.wait (%p2088_p10), %s1627_s12, 2048  }
 0x4e5   : > { %2470 = vsyncadd (%p2088_p10), %s1627_s12, 4294965248  ;;  %s24_s20 = sadd.s32 1, %s2493_s20   ;;  %s3216_s15 = smov %s2477_s16 }
 0x4e6   : > { %p21_p9 = scmp.ge.s32.totalorder %s24_s20, 6   ;;  %s3217_s16 = smov %s2481_s17 }
 0x4e7   : > { %s3218_s17 = smov %s2639_s30  ;;  %s3219_s18 = smov %s2489_s19 }
 0x4e8   : > { %s3220_s19 = smov %s3222_s13  ;;  %23 = sbr.rel (!%p21_p9) target bundleno = 13 (0xd), region = 107 }
 0x4ed   :  { %1632 = vsyncpa [#allocation5], 1 }
 0x4ee   :  { %1634 = vsyncpa [#allocation5 + $0x1], 1 }
 0x4ef   :  { %1635 = vsyncpa [#allocation8], 1 }
 0x4f0   :  { %1637 = vsyncpa [#allocation8 + $0x1], 1 }
 0x4f1   :  { %1638 = vsyncpa [#allocation11], 1 }
 0x4f2   :  { %1639 = vsyncpa [#allocation6], 1 }
 0x4f3   :  { %1641 = vsyncpa [#allocation6 + $0x1], 1 }

</bundles_post_ra>
